<compile_context>
chip_gen: v7x
topology: tpu7x:2x2x1
jax: 0.10.0
libtpu: 0.0.40
codegen_flags: <defaults>
</compile_context>

<pallas_src>
import jax
import jax.numpy as jnp
from jax.experimental import pallas as pl
from jax.experimental.pallas import tpu as pltpu

ZP_DIM = 3
ZS_DIM = 5
VOCAB = 10
HIDDEN = 512
OUT_DIM = 2 * ZP_DIM + ZS_DIM   # 11
OUT_PAD = 128                    # lane-dense padded output width
TILE_B = 128                     # batch rows per grid step


def text_encoder_kernel(onehot_ref, emb_ref, w2_ref, b2_ref, w3_ref, b3_ref,
                        stats_ref):
    # fc1: embedding lookup expressed as bf16 one-hot matmul (f32 accumulate) + swish.
    h1 = jnp.dot(onehot_ref[...], emb_ref[...],
                 preferred_element_type=jnp.float32)
    h1 = h1 * jax.nn.sigmoid(h1)

    # fc2 + swish (bf16 MXU pass, f32 accumulate, f32 bias).
    h2 = jnp.dot(h1.astype(jnp.bfloat16), w2_ref[...],
                 preferred_element_type=jnp.float32) + b2_ref[...]
    h2 = h2 * jax.nn.sigmoid(h2)

    # fc3: output columns zero-padded to 128 lanes -> single unmasked lane-dense store.
    stats_ref[...] = jnp.dot(h2.astype(jnp.bfloat16), w3_ref[...],
                             preferred_element_type=jnp.float32) + b3_ref[...]


@jax.jit
def text_encoder(x_idx, emb, w2, b2, w3, b3):
    """x_idx: (B,) int32 token indices in [0, 10).

    emb: (10, 512); w2: (512, 512); b2: (1, 512); w3: (512, 11); b3: (1, 11)
    (weights already transposed to (in, out) relative to torch.nn.Linear.weight)
    """
    B = x_idx.shape[0]
    num_tiles = pl.cdiv(B, TILE_B)
    B_pad = num_tiles * TILE_B

    # One-hot in bf16 (out-of-range indices map to a zero row; swish(0)=0).
    onehot = jax.nn.one_hot(x_idx, VOCAB, dtype=jnp.bfloat16)
    onehot = jnp.pad(onehot, ((0, B_pad - B), (0, 0)))

    # bf16 weights (halves HBM traffic); biases stay f32 (tiny).
    emb_bf = emb.astype(jnp.bfloat16)
    w2_bf = w2.astype(jnp.bfloat16)
    b2_f32 = b2.astype(jnp.float32)
    # Pad fc3 to 128 output columns with zeros so the kernel output is lane-dense.
    w3_pad = jnp.zeros((HIDDEN, OUT_PAD), jnp.bfloat16).at[:, :OUT_DIM].set(
        w3.astype(jnp.bfloat16))
    b3_pad = jnp.zeros((1, OUT_PAD), jnp.float32).at[:, :OUT_DIM].set(
        b3.astype(jnp.float32))

    stats_pad = pl.pallas_call(
        text_encoder_kernel,
        out_shape=jax.ShapeDtypeStruct((B_pad, OUT_PAD), jnp.float32),
        grid=(num_tiles,),
        in_specs=[
            pl.BlockSpec((TILE_B, VOCAB), lambda i: (i, 0)),
            pl.BlockSpec((VOCAB, HIDDEN), lambda i: (0, 0)),   # weights: constant
            pl.BlockSpec((HIDDEN, HIDDEN), lambda i: (0, 0)),  # block index -> stay
            pl.BlockSpec((1, HIDDEN), lambda i: (0, 0)),       # VMEM-resident across
            pl.BlockSpec((HIDDEN, OUT_PAD), lambda i: (0, 0)), # batch tiles
            pl.BlockSpec((1, OUT_PAD), lambda i: (0, 0)),
        ],
        out_specs=pl.BlockSpec((TILE_B, OUT_PAD), lambda i: (i, 0)),
        compiler_params=pltpu.CompilerParams(
            dimension_semantics=("parallel",),   # v7x: 2 TCs split batch tiles
            vmem_limit_bytes=8 << 20),
    )(onehot, emb_bf, w2_bf, b2_f32, w3_pad, b3_pad)

    # Cheap per-column post-processing in XLA (free relative to the weight DMA).
    stats = stats_pad[:B, :OUT_DIM]
    mu = stats[:, :ZP_DIM]
    logvar = stats[:, ZP_DIM:2 * ZP_DIM]
    std = jnp.exp(0.5 * logvar)                # == sqrt(exp(logvar)), overflow-safe
    cate = jax.nn.softmax(stats[:, 2 * ZP_DIM:], axis=1)
    return mu, std, logvar, cate


def reference(x_idx, emb, w2, b2, w3, b3):
    """Pure-JAX f32 reference of the PyTorch forward."""
    swish = lambda v: v * jax.nn.sigmoid(v)
    h = swish(jnp.take(emb, x_idx, axis=0))
    h = swish(h @ w2 + b2)
    stats = h @ w3 + b3
    mu = stats[:, :ZP_DIM]
    logvar = stats[:, ZP_DIM:2 * ZP_DIM]
    std = jnp.sqrt(jnp.exp(logvar))
    cate = jax.nn.softmax(stats[:, 2 * ZP_DIM:], axis=1)
    return mu, std, logvar, cate


def _check(got, ref, name, atol):
    assert jnp.allclose(got, ref, atol=atol, rtol=2e-2), f"{name} mismatch"


if __name__ == "__main__":
    key = jax.random.PRNGKey(0)
    k_x, k_emb, k_w2, k_b2, k_w3, k_b3 = jax.random.split(key, 6)

    # Deterministic synthetic parameters (shapes from the module's __init__).
    emb = jax.random.normal(k_emb, (VOCAB, HIDDEN), jnp.float32) * 0.1
    w2 = jax.random.normal(k_w2, (HIDDEN, HIDDEN), jnp.float32) * 0.05
    b2 = jax.random.normal(k_b2, (1, HIDDEN), jnp.float32) * 0.05
    w3 = jax.random.normal(k_w3, (HIDDEN, OUT_DIM), jnp.float32) * 0.05
    b3 = jax.random.normal(k_b3, (1, OUT_DIM), jnp.float32) * 0.05

    # Small primary check (B=8) + a multi-tile check (B=300, grid of 3).
    for B in (8, 300):
        x_idx = jax.random.randint(k_x, (B,), 0, VOCAB, dtype=jnp.int32)

        mu, std, logvar, cate = jax.block_until_ready(
            text_encoder(x_idx, emb, w2, b2, w3, b3))
        mu_r, std_r, logvar_r, cate_r = reference(x_idx, emb, w2, b2, w3, b3)

        # bf16 weight/activation rounding -> tolerances loosened vs. pure f32.
        _check(mu, mu_r, "muPrivate", 2e-2)
        _check(std, std_r, "stdPrivate", 2e-2)
        _check(logvar, logvar_r, "logvarPrivate", 2e-2)
        _check(cate, cate_r, "cate_prob", 2e-2)
        assert jnp.allclose(jnp.sum(cate, axis=1), 1.0, atol=1e-5), \
            "softmax not normalized"

    print("KERNEL_OK")
</pallas_src>

<mosaic_0001>
module attributes {stable_mosaic.version = 11 : i64} {
  func.func @text_encoder_kernel(%arg0: i32, %arg1: memref<128x10xbf16, #tpu.memory_space<vmem>>, %arg2: memref<10x512xbf16, #tpu.memory_space<vmem>>, %arg3: memref<512x512xbf16, #tpu.memory_space<vmem>>, %arg4: memref<1x512xf32, #tpu.memory_space<vmem>>, %arg5: memref<512x128xbf16, #tpu.memory_space<vmem>>, %arg6: memref<1x128xf32, #tpu.memory_space<vmem>>, %arg7: memref<128x128xf32, #tpu.memory_space<vmem>>) attributes {dimension_semantics = [#tpu.dimension_semantics<parallel>], iteration_bounds = array<i64: 1>, scalar_prefetch = 0 : i64, scratch_operands = 0 : i64, tpu.core_type = #tpu.core_type<tc>, window_params = [{transform_indices = @transform_0, window_bounds = array<i64: 128, 10>}, {pipeline_mode = #tpu.pipeline_mode<synchronous>, transform_indices = @transform_1, window_bounds = array<i64: 10, 512>}, {pipeline_mode = #tpu.pipeline_mode<synchronous>, transform_indices = @transform_2, window_bounds = array<i64: 512, 512>}, {pipeline_mode = #tpu.pipeline_mode<synchronous>, transform_indices = @transform_3, window_bounds = array<i64: 1, 512>}, {pipeline_mode = #tpu.pipeline_mode<synchronous>, transform_indices = @transform_4, window_bounds = array<i64: 512, 128>}, {pipeline_mode = #tpu.pipeline_mode<synchronous>, transform_indices = @transform_5, window_bounds = array<i64: 1, 128>}, {transform_indices = @transform_6, window_bounds = array<i64: 128, 128>}]} {
    %c0 = arith.constant 0 : index
    %c0_0 = arith.constant 0 : index
    %0 = vector.load %arg1[%c0, %c0_0] : memref<128x10xbf16, #tpu.memory_space<vmem>>, vector<128x10xbf16>
    %c0_1 = arith.constant 0 : index
    %c0_2 = arith.constant 0 : index
    %1 = vector.load %arg2[%c0_1, %c0_2] : memref<10x512xbf16, #tpu.memory_space<vmem>>, vector<10x512xbf16>
    %cst = arith.constant dense<0.000000e+00> : vector<128x512xf32>
    %2 = tpu.matmul %0, %1, %cst {dimension_numbers = #tpu.dot_dimension_numbers<[1], [0], [0], [1], [0, 0, 1, 1], [], []>} : vector<128x10xbf16>, vector<10x512xbf16>, vector<128x512xf32> -> vector<128x512xf32>
    %3 = arith.negf %2 : vector<128x512xf32>
    %4 = math.exp %3 : vector<128x512xf32>
    %cst_3 = arith.constant 1.000000e+00 : f32
    %5 = vector.broadcast %cst_3 : f32 to vector<128x512xf32>
    %6 = arith.addf %5, %4 : vector<128x512xf32>
    %7 = arith.divf %5, %6 : vector<128x512xf32>
    %8 = arith.mulf %2, %7 : vector<128x512xf32>
    %9 = arith.truncf %8 : vector<128x512xf32> to vector<128x512xbf16>
    %c0_4 = arith.constant 0 : index
    %c0_5 = arith.constant 0 : index
    %10 = vector.load %arg3[%c0_4, %c0_5] : memref<512x512xbf16, #tpu.memory_space<vmem>>, vector<512x512xbf16>
    %cst_6 = arith.constant dense<0.000000e+00> : vector<128x512xf32>
    %11 = tpu.matmul %9, %10, %cst_6 {dimension_numbers = #tpu.dot_dimension_numbers<[1], [0], [0], [1], [0, 0, 1, 1], [], []>} : vector<128x512xbf16>, vector<512x512xbf16>, vector<128x512xf32> -> vector<128x512xf32>
    %c0_7 = arith.constant 0 : index
    %c0_8 = arith.constant 0 : index
    %12 = vector.load %arg4[%c0_7, %c0_8] : memref<1x512xf32, #tpu.memory_space<vmem>>, vector<1x512xf32>
    %13 = vector.broadcast %12 : vector<1x512xf32> to vector<128x512xf32>
    %14 = arith.addf %11, %13 : vector<128x512xf32>
    %15 = arith.negf %14 : vector<128x512xf32>
    %16 = math.exp %15 : vector<128x512xf32>
    %cst_9 = arith.constant 1.000000e+00 : f32
    %17 = vector.broadcast %cst_9 : f32 to vector<128x512xf32>
    %18 = arith.addf %17, %16 : vector<128x512xf32>
    %19 = arith.divf %17, %18 : vector<128x512xf32>
    %20 = arith.mulf %14, %19 : vector<128x512xf32>
    %21 = arith.truncf %20 : vector<128x512xf32> to vector<128x512xbf16>
    %c0_10 = arith.constant 0 : index
    %c0_11 = arith.constant 0 : index
    %22 = vector.load %arg5[%c0_10, %c0_11] : memref<512x128xbf16, #tpu.memory_space<vmem>>, vector<512x128xbf16>
    %cst_12 = arith.constant dense<0.000000e+00> : vector<128x128xf32>
    %23 = tpu.matmul %21, %22, %cst_12 {dimension_numbers = #tpu.dot_dimension_numbers<[1], [0], [0], [1], [0, 0, 1, 1], [], []>} : vector<128x512xbf16>, vector<512x128xbf16>, vector<128x128xf32> -> vector<128x128xf32>
    %c0_13 = arith.constant 0 : index
    %c0_14 = arith.constant 0 : index
    %24 = vector.load %arg6[%c0_13, %c0_14] : memref<1x128xf32, #tpu.memory_space<vmem>>, vector<1x128xf32>
    %25 = vector.broadcast %24 : vector<1x128xf32> to vector<128x128xf32>
    %26 = arith.addf %23, %25 : vector<128x128xf32>
    %c0_15 = arith.constant 0 : index
    %c0_16 = arith.constant 0 : index
    %27 = vector.load %arg7[%c0_15, %c0_16] : memref<128x128xf32, #tpu.memory_space<vmem>>, vector<128x128xf32>
    tpu.vector_store %arg7[%c0_15, %c0_16], %26 {strides = array<i32>} : memref<128x128xf32, #tpu.memory_space<vmem>>, vector<128x128xf32>,
    return
  }
  func.func @transform_0(%arg0: i32) -> (i32, i32) {
    %c0_i32 = arith.constant 0 : i32
    %c0_i32_0 = arith.constant 0 : i32
    return %arg0, %c0_i32 : i32, i32
  }
  func.func @transform_1(%arg0: i32) -> (i32, i32) {
    %c0_i32 = arith.constant 0 : i32
    %c0_i32_0 = arith.constant 0 : i32
    %c0_i32_1 = arith.constant 0 : i32
    return %c0_i32, %c0_i32_0 : i32, i32
  }
  func.func @transform_2(%arg0: i32) -> (i32, i32) {
    %c0_i32 = arith.constant 0 : i32
    %c0_i32_0 = arith.constant 0 : i32
    %c0_i32_1 = arith.constant 0 : i32
    return %c0_i32, %c0_i32_0 : i32, i32
  }
  func.func @transform_3(%arg0: i32) -> (i32, i32) {
    %c0_i32 = arith.constant 0 : i32
    %c0_i32_0 = arith.constant 0 : i32
    %c0_i32_1 = arith.constant 0 : i32
    return %c0_i32, %c0_i32_0 : i32, i32
  }
  func.func @transform_4(%arg0: i32) -> (i32, i32) {
    %c0_i32 = arith.constant 0 : i32
    %c0_i32_0 = arith.constant 0 : i32
    %c0_i32_1 = arith.constant 0 : i32
    return %c0_i32, %c0_i32_0 : i32, i32
  }
  func.func @transform_5(%arg0: i32) -> (i32, i32) {
    %c0_i32 = arith.constant 0 : i32
    %c0_i32_0 = arith.constant 0 : i32
    %c0_i32_1 = arith.constant 0 : i32
    return %c0_i32, %c0_i32_0 : i32, i32
  }
  func.func @transform_6(%arg0: i32) -> (i32, i32) {
    %c0_i32 = arith.constant 0 : i32
    %c0_i32_0 = arith.constant 0 : i32
    return %arg0, %c0_i32 : i32, i32
  }
}

</mosaic_0001>

<bundles_post_ra>
// kernel: text_encoder.1
= control target key start
LH: loop header
LB: loop body
LE: loop exit
PB: predicated region body
PF: predicated region fallthrough
CT: control target
= control target key end

     0   :  { %vm125_vm0 = vcmask 1044480   ;;  %v4369_v1 = vmov 0   ;;  %vm100_vm1 = vcmask 80896   ;;  %s5845_s1 = inlined_call_operand.vmem [shape: bf16[10,512], index: 1, kind: input, shape index: {}]   ;;  %s5846_s0 = inlined_call_operand.vmem [shape: bf16[128,10], index: 0, kind: input, shape index: {}]   ;;  %s5847_s2 = inlined_call_operand.vmem [shape: bf16[512,512], index: 2, kind: input, shape index: {}]   ;;  %s5848_s4 = inlined_call_operand.vmem [shape: bf16[512,128], index: 4, kind: input, shape index: {}]   ;;  %s5849_s3 = inlined_call_operand.vmem [shape: f32[1,512], index: 3, kind: input, shape index: {}]   ;;  %s5850_s5 = inlined_call_operand.vmem [shape: f32[1,128], index: 5, kind: input, shape index: {}]   ;;  %s5851_s6 = inlined_call_operand.vmem [shape: f32[128,128], index: 6, kind: output, shape index: {}]  }
   0x1   :  { %v3619_v0 = vld [vmem:[%s5845_s1 + $0x4] ss:$16 sps:$4 sm:$0x1f]   ;;  %170 = vmatprep.mubr.bf16.mxu0 %v4369_v1  ;;  %283 = vmatprep.mubr.bf16.mxu1 %v4369_v1  ;;  %v3621_v2 = vld [vmem:[%s5845_s1] ss:$16 sps:$4 sm:$0x1f]  }
   0x2   :  { %3055 = vmatprep.subr.msk.bf16.mxu0 %vm125_vm0, %v3619_v0  ;;  %v127_v3 = vsel %vm125_vm0, %v3621_v2, 0  ;;  %v3622_v4 = vld [vmem:[%s5846_s0] sm:$0xff]   ;;  %v3626_v5 = vld [vmem:[%s5845_s1 + $0xc] ss:$16 sps:$4 sm:$0x1f]   ;;  %v3624_v20 = vld [vmem:[%s5846_s0 + $0x10] sm:$0xff]  }
   0x3   :  { %139 = vmatpush1.bf16.msra.mxu0 %v127_v3  ;;  %v3629_v6 = vld [vmem:[%s5845_s1 + $0x8] ss:$16 sps:$4 sm:$0x1f]   ;;  %3064 = vmatprep.subr.msk.bf16.mxu1 %vm125_vm0, %v3626_v5  ;;  %v3633_v9 = vld [vmem:[%s5847_s2] ss:$16 sps:$4 sm:$0xff]  }
   0x4   :  { %v133_v7 = vsel %vm125_vm0, %v3629_v6, 0  ;;  %v3623_v8 = vld [vmem:[%s5846_s0 + $0x8] sm:$0xff]   ;;  %v3635_v10 = vld [vmem:[%s5847_s2 + $0x4] ss:$16 sps:$4 sm:$0xff]   ;;  %v3639_v13 = vld [vmem:[%s5847_s2 + $0x20] ss:$16 sps:$4 sm:$0xff]  }
   0x5   :  { %252 = vmatpush1.bf16.msra.mxu1 %v133_v7  ;;  %v3636_v11 = vld [vmem:[%s5847_s2 + $0x8] ss:$16 sps:$4 sm:$0xff]   ;;  %1634 = vmatprep.subr.bf16.mxu0 %v3635_v10  ;;  %v3638_v12 = vld [vmem:[%s5847_s2 + $0xc] ss:$16 sps:$4 sm:$0xff]   ;;  %v3641_v14 = vld [vmem:[%s5847_s2 + $0x24] ss:$16 sps:$4 sm:$0xff]  }
   0x6   :  { %3056 = vmatmul.mubr.msk.bf16.vlgmr.msra.gmra.mrb[0].mxu0 %vm100_vm1, %v3622_v4  ;;  %1860 = vmatprep.subr.bf16.mxu1 %v3638_v12  ;;  %v3644_v15 = vld [vmem:[%s5847_s2 + $0x2c] ss:$16 sps:$4 sm:$0xff]   ;;  %v3642_v16 = vld [vmem:[%s5847_s2 + $0x28] ss:$16 sps:$4 sm:$0xff]   ;;  %v3647_v17 = vld [vmem:[%s5847_s2 + $0x44] ss:$16 sps:$4 sm:$0xff]  }
   0x7   :  { %180 = vmatprep.mubr.bf16.mxu0 %v4369_v1  ;;  %1635 = vmatpush1.bf16.msra.mxu0 %v3633_v9  ;;  %v3645_v18 = vld [vmem:[%s5847_s2 + $0x40] ss:$16 sps:$4 sm:$0xff]   ;;  %v3650_v19 = vld [vmem:[%s5847_s2 + $0x4c] ss:$16 sps:$4 sm:$0xff]   ;;  %v3653_v21 = vld [vmem:[%s5847_s2 + $0x64] ss:$16 sps:$4 sm:$0xff]  }
   0x8   :  { %3065 = vmatmul.mubr.msk.bf16.vlgmr.msra.gmra.mrb[0].mxu1 %vm100_vm1, %v3622_v4  ;;  %1636 = vmatprep.subr.bf16.mxu0 %v3641_v14  ;;  %v3648_v22 = vld [vmem:[%s5847_s2 + $0x48] ss:$16 sps:$4 sm:$0xff]   ;;  %v3656_v23 = vld [vmem:[%s5847_s2 + $0x6c] ss:$16 sps:$4 sm:$0xff]   ;;  %v3651_v24 = vld [vmem:[%s5847_s2 + $0x60] ss:$16 sps:$4 sm:$0xff]  }
   0x9   :  { %293 = vmatprep.mubr.bf16.mxu1 %v4369_v1  ;;  %1861 = vmatpush1.bf16.msra.mxu1 %v3636_v11  ;;  %v3659_v25 = vld [vmem:[%s5847_s2 + $0x84] ss:$16 sps:$4 sm:$0xff]   ;;  %v3654_v26 = vld [vmem:[%s5847_s2 + $0x68] ss:$16 sps:$4 sm:$0xff]   ;;  %v3662_v27 = vld [vmem:[%s5847_s2 + $0x8c] ss:$16 sps:$4 sm:$0xff]  }
   0xa   :  { %1862 = vmatprep.subr.bf16.mxu1 %v3644_v15  ;;  %v3657_v28 = vld [vmem:[%s5847_s2 + $0x80] ss:$16 sps:$4 sm:$0xff]   ;;  %v3625_v29 = vld [vmem:[%s5846_s0 + $0x18] sm:$0xff]   ;;  %v3665_v30 = vld [vmem:[%s5847_s2 + $0xa4] ss:$16 sps:$4 sm:$0xff]  }
   0xb   :  { %1637 = vmatpush1.bf16.msra.mxu0 %v3639_v13  ;;  %v3660_v31 = vld [vmem:[%s5847_s2 + $0x88] ss:$16 sps:$4 sm:$0xff]   ;;  %v3668_v32 = vld [vmem:[%s5847_s2 + $0xac] ss:$16 sps:$4 sm:$0xff]   ;;  %v3663_v33 = vld [vmem:[%s5847_s2 + $0xa0] ss:$16 sps:$4 sm:$0xff]  }
   0xc   :  { %1638 = vmatprep.subr.bf16.mxu0 %v3647_v17  ;;  %v3666_v34 = vld [vmem:[%s5847_s2 + $0xa8] ss:$16 sps:$4 sm:$0xff]   ;;  %v3671_v35 = vld [vmem:[%s5847_s2 + $0xc4] ss:$16 sps:$4 sm:$0xff]   ;;  %v3674_v36 = vld [vmem:[%s5847_s2 + $0xcc] ss:$16 sps:$4 sm:$0xff]  }
   0xd   :  { %1863 = vmatpush1.bf16.msra.mxu1 %v3642_v16  ;;  %v3669_v37 = vld [vmem:[%s5847_s2 + $0xc0] ss:$16 sps:$4 sm:$0xff]   ;;  %v3677_v39 = vld [vmem:[%s5847_s2 + $0xe4] ss:$16 sps:$4 sm:$0xff]   ;;  %v3672_v40 = vld [vmem:[%s5847_s2 + $0xc8] ss:$16 sps:$4 sm:$0xff]  }
   0xe   :  { %3057 = vmatmul.mubr.msk.bf16.gmra.mrb[4].mxu0 %vm100_vm1, %v3623_v8  ;;  %1864 = vmatprep.subr.bf16.mxu1 %v3650_v19  ;;  %v3628_v38 = vld [vmem:[%s5846_s0 + $0x20] sm:$0xff]   ;;  %v3680_v41 = vld [vmem:[%s5847_s2 + $0xec] ss:$16 sps:$4 sm:$0xff]   ;;  %v3678_v43 = vld [vmem:[%s5847_s2 + $0xe8] ss:$16 sps:$4 sm:$0xff]  }
   0xf   :  { %190 = vmatprep.mubr.bf16.mxu0 %v4369_v1  ;;  %1639 = vmatpush1.bf16.msra.mxu0 %v3645_v18  ;;  %v3675_v42 = vld [vmem:[%s5847_s2 + $0xe0] ss:$16 sps:$4 sm:$0xff]   ;;  %v3630_v44 = vld [vmem:[%s5846_s0 + $0x28] sm:$0xff]   ;;  %v3632_v46 = vld [vmem:[%s5846_s0 + $0x38] sm:$0xff]  }
  0x10   :  { %3066 = vmatmul.mubr.msk.bf16.gmra.mrb[4].mxu1 %vm100_vm1, %v3623_v8  ;;  %1640 = vmatprep.subr.bf16.mxu0 %v3653_v21  ;;  %v3631_v45 = vld [vmem:[%s5846_s0 + $0x30] sm:$0xff]   ;;  %v3686_v48 = vld [vmem:[%s5847_s2 + $0x10c] ss:$16 sps:$4 sm:$0xff]   ;;  %v3684_v50 = vld [vmem:[%s5847_s2 + $0x108] ss:$16 sps:$4 sm:$0xff]  }
  0x11   :  { %303 = vmatprep.mubr.bf16.mxu1 %v4369_v1  ;;  %1865 = vmatpush1.bf16.msra.mxu1 %v3648_v22  ;;  %v3683_v47 = vld [vmem:[%s5847_s2 + $0x104] ss:$16 sps:$4 sm:$0xff]   ;;  %v3681_v49 = vld [vmem:[%s5847_s2 + $0x100] ss:$16 sps:$4 sm:$0xff]   ;;  %v3692_v52 = vld [vmem:[%s5847_s2 + $0x12c] ss:$16 sps:$4 sm:$0xff]  }
  0x12   :  { %1866 = vmatprep.subr.bf16.mxu1 %v3656_v23  ;;  %v3689_v51 = vld [vmem:[%s5847_s2 + $0x124] ss:$16 sps:$4 sm:$0xff]   ;;  %v3687_v53 = vld [vmem:[%s5847_s2 + $0x120] ss:$16 sps:$4 sm:$0xff]   ;;  %v3690_v54 = vld [vmem:[%s5847_s2 + $0x128] ss:$16 sps:$4 sm:$0xff]  }
  0x13   :  { %1641 = vmatpush1.bf16.msra.mxu0 %v3651_v24  ;;  %v3695_v55 = vld [vmem:[%s5847_s2 + $0x144] ss:$16 sps:$4 sm:$0xff]   ;;  %v3698_v56 = vld [vmem:[%s5847_s2 + $0x14c] ss:$16 sps:$4 sm:$0xff]   ;;  %v3693_v57 = vld [vmem:[%s5847_s2 + $0x140] ss:$16 sps:$4 sm:$0xff]  }
  0x14   :  { %1642 = vmatprep.subr.bf16.mxu0 %v3659_v25  ;;  %v3696_v58 = vld [vmem:[%s5847_s2 + $0x148] ss:$16 sps:$4 sm:$0xff]   ;;  %v3701_v59 = vld [vmem:[%s5847_s2 + $0x164] ss:$16 sps:$4 sm:$0xff]   ;;  %v3704_v60 = vld [vmem:[%s5847_s2 + $0x16c] ss:$16 sps:$4 sm:$0xff]  }
  0x15   :  { %1867 = vmatpush1.bf16.msra.mxu1 %v3654_v26  ;;  %v3699_v61 = vld [vmem:[%s5847_s2 + $0x160] ss:$16 sps:$4 sm:$0xff]   ;;  %v3702_v62 = vld [vmem:[%s5847_s2 + $0x168] ss:$16 sps:$4 sm:$0xff]   ;;  %v3707_v63 = vld [vmem:[%s5847_s2 + $0x184] ss:$16 sps:$4 sm:$0xff]  }
  0x16   :  { %3058 = vmatmul.mubr.msk.bf16.gmra.mrb[8].mxu0 %vm100_vm1, %v3624_v20  ;;  %1868 = vmatprep.subr.bf16.mxu1 %v3662_v27  ;;  %v3710_v0 = vld [vmem:[%s5847_s2 + $0x18c] ss:$16 sps:$4 sm:$0xff]   ;;  %v3708_v2 = vld [vmem:[%s5847_s2 + $0x188] ss:$16 sps:$4 sm:$0xff]   ;;  %v3713_v3 = vld [vmem:[%s5847_s2 + $0x1a4] ss:$16 sps:$4 sm:$0xff]  }
  0x17   :  { %200 = vmatprep.mubr.bf16.mxu0 %v4369_v1  ;;  %1643 = vmatpush1.bf16.msra.mxu0 %v3657_v28  ;;  %v3716_v4 = vld [vmem:[%s5847_s2 + $0x1ac] ss:$16 sps:$4 sm:$0xff]   ;;  %v3711_v5 = vld [vmem:[%s5847_s2 + $0x1a0] ss:$16 sps:$4 sm:$0xff]   ;;  %v3714_v6 = vld [vmem:[%s5847_s2 + $0x1a8] ss:$16 sps:$4 sm:$0xff]  }
  0x18   :  { %3067 = vmatmul.mubr.msk.bf16.gmra.mrb[8].mxu1 %vm100_vm1, %v3624_v20  ;;  %1644 = vmatprep.subr.bf16.mxu0 %v3665_v30  ;;  %v3719_v7 = vld [vmem:[%s5847_s2 + $0x1c4] ss:$16 sps:$4 sm:$0xff]   ;;  %v3722_v8 = vld [vmem:[%s5847_s2 + $0x1cc] ss:$16 sps:$4 sm:$0xff]   ;;  %v3717_v9 = vld [vmem:[%s5847_s2 + $0x1c0] ss:$16 sps:$4 sm:$0xff]  }
  0x19   :  { %313 = vmatprep.mubr.bf16.mxu1 %v4369_v1  ;;  %1869 = vmatpush1.bf16.msra.mxu1 %v3660_v31  ;;  %v3720_v10 = vld [vmem:[%s5847_s2 + $0x1c8] ss:$16 sps:$4 sm:$0xff]   ;;  %v3725_v11 = vld [vmem:[%s5847_s2 + $0x1e4] ss:$16 sps:$4 sm:$0xff]   ;;  %v3728_v12 = vld [vmem:[%s5847_s2 + $0x1ec] ss:$16 sps:$4 sm:$0xff]  }
  0x1a   :  { %1870 = vmatprep.subr.bf16.mxu1 %v3668_v32  ;;  %v3723_v13 = vld [vmem:[%s5847_s2 + $0x1e0] ss:$16 sps:$4 sm:$0xff]   ;;  %v3726_v14 = vld [vmem:[%s5847_s2 + $0x1e8] ss:$16 sps:$4 sm:$0xff]   ;;  %v3731_v15 = vld [vmem:[%s5847_s2 + $0x204] ss:$16 sps:$4 sm:$0xff]  }
  0x1b   :  { %1645 = vmatpush1.bf16.msra.mxu0 %v3663_v33  ;;  %v3734_v16 = vld [vmem:[%s5847_s2 + $0x20c] ss:$16 sps:$4 sm:$0xff]  }
  0x1c   :  { %1646 = vmatprep.subr.bf16.mxu0 %v3671_v35 }
  0x1d   :  { %1871 = vmatpush1.bf16.msra.mxu1 %v3666_v34 }
  0x1e   :  { %3059 = vmatmul.mubr.msk.bf16.gmra.mrb[12].mxu0 %vm100_vm1, %v3625_v29  ;;  %1872 = vmatprep.subr.bf16.mxu1 %v3674_v36 }
  0x1f   :  { %210 = vmatprep.mubr.bf16.mxu0 %v4369_v1  ;;  %1647 = vmatpush1.bf16.msra.mxu0 %v3669_v37 }
  0x20   :  { %3068 = vmatmul.mubr.msk.bf16.gmra.mrb[12].mxu1 %vm100_vm1, %v3625_v29  ;;  %1648 = vmatprep.subr.bf16.mxu0 %v3677_v39 }
  0x21   :  { %323 = vmatprep.mubr.bf16.mxu1 %v4369_v1  ;;  %1873 = vmatpush1.bf16.msra.mxu1 %v3672_v40 }
  0x22   :  { %1874 = vmatprep.subr.bf16.mxu1 %v3680_v41 }
  0x23   :  { %1649 = vmatpush1.bf16.msra.mxu0 %v3675_v42 }
  0x24   :  { %1650 = vmatprep.subr.bf16.mxu0 %v3683_v47 }
  0x25   :  { %1875 = vmatpush1.bf16.msra.mxu1 %v3678_v43 }
  0x26   :  { %3060 = vmatmul.mubr.msk.bf16.gmra.mrb[16].mxu0 %vm100_vm1, %v3628_v38  ;;  %1876 = vmatprep.subr.bf16.mxu1 %v3686_v48 }
  0x27   :  { %220 = vmatprep.mubr.bf16.mxu0 %v4369_v1  ;;  %1651 = vmatpush1.bf16.msra.mxu0 %v3681_v49 }
  0x28   :  { %3069 = vmatmul.mubr.msk.bf16.gmra.mrb[16].mxu1 %vm100_vm1, %v3628_v38  ;;  %1652 = vmatprep.subr.bf16.mxu0 %v3689_v51 }
  0x29   :  { %333 = vmatprep.mubr.bf16.mxu1 %v4369_v1  ;;  %1877 = vmatpush1.bf16.msra.mxu1 %v3684_v50 }
  0x2a   :  { %1878 = vmatprep.subr.bf16.mxu1 %v3692_v52 }
  0x2b   :  { %1653 = vmatpush1.bf16.msra.mxu0 %v3687_v53 }
  0x2c   :  { %1654 = vmatprep.subr.bf16.mxu0 %v3695_v55 }
  0x2d   :  { %1879 = vmatpush1.bf16.msra.mxu1 %v3690_v54 }
  0x2e   :  { %3061 = vmatmul.mubr.msk.bf16.gmra.mrb[20].mxu0 %vm100_vm1, %v3630_v44  ;;  %1880 = vmatprep.subr.bf16.mxu1 %v3698_v56 }
  0x2f   :  { %230 = vmatprep.mubr.bf16.mxu0 %v4369_v1  ;;  %1655 = vmatpush1.bf16.msra.mxu0 %v3693_v57 }
  0x30   :  { %3070 = vmatmul.mubr.msk.bf16.gmra.mrb[20].mxu1 %vm100_vm1, %v3630_v44  ;;  %1656 = vmatprep.subr.bf16.mxu0 %v3701_v59 }
  0x31   :  { %343 = vmatprep.mubr.bf16.mxu1 %v4369_v1  ;;  %1881 = vmatpush1.bf16.msra.mxu1 %v3696_v58 }
  0x32   :  { %1882 = vmatprep.subr.bf16.mxu1 %v3704_v60 }
  0x33   :  { %1657 = vmatpush1.bf16.msra.mxu0 %v3699_v61 }
  0x34   :  { %1658 = vmatprep.subr.bf16.mxu0 %v3707_v63 }
  0x35   :  { %1883 = vmatpush1.bf16.msra.mxu1 %v3702_v62 }
  0x36   :  { %3062 = vmatmul.mubr.msk.bf16.gmra.mrb[24].mxu0 %vm100_vm1, %v3631_v45  ;;  %1884 = vmatprep.subr.bf16.mxu1 %v3710_v0 }
  0x37   :  { %240 = vmatprep.mubr.bf16.mxu0 %v4369_v1 }
  0x38   :  { %3071 = vmatmul.mubr.msk.bf16.gmra.mrb[24].mxu1 %vm100_vm1, %v3631_v45 }
  0x39   :  { %353 = vmatprep.mubr.bf16.mxu1 %v4369_v1  ;;  %v3705_v1 = vld [vmem:[%s5847_s2 + $0x180] ss:$16 sps:$4 sm:$0xff]   ;;  %1885 = vmatpush1.bf16.msra.mxu1 %v3708_v2 }
  0x3a   :  { %1659 = vmatpush1.bf16.msra.mxu0 %v3705_v1  ;;  %1886 = vmatprep.subr.bf16.mxu1 %v3716_v4 }
  0x3b   :  { %1660 = vmatprep.subr.bf16.mxu0 %v3713_v3 }
  0x3d   :  { %1887 = vmatpush1.bf16.msra.mxu1 %v3714_v6 }
  0x3e   :  { %3063 = vmatmul.mubr.msk.bf16.gmra.mrb[28].mxu0 %vm100_vm1, %v3632_v46  ;;  %1888 = vmatprep.subr.bf16.mxu1 %v3722_v8 }
  0x3f   :  { %1661 = vmatpush1.bf16.msra.mxu0 %v3711_v5 }
  0x40   :  { %3072 = vmatmul.mubr.msk.bf16.gmra.mrb[28].mxu1 %vm100_vm1, %v3632_v46  ;;  %1662 = vmatprep.subr.bf16.mxu0 %v3719_v7 }
  0x41   :  { %1889 = vmatpush1.bf16.msra.mxu1 %v3720_v10 }
  0x42   :  { %1890 = vmatprep.subr.bf16.mxu1 %v3728_v12 }
  0x43   :  { %1663 = vmatpush1.bf16.msra.mxu0 %v3717_v9 }
  0x44   :  { %1664 = vmatprep.subr.bf16.mxu0 %v3725_v11 }
  0x45   :  { %1891 = vmatpush1.bf16.msra.mxu1 %v3726_v14 }
  0x46   :  { %1973 = vmatprep.subr.bf16.mxu1 %v3734_v16 }
  0x47   :  { %1665 = vmatpush1.bf16.msra.mxu0 %v3723_v13 }
  0x48   :  { %1747 = vmatprep.subr.bf16.mxu0 %v3731_v15 }
  0xd9   :  { %v4675_v17 = vpop.f32.mrb[0].mxu0 }
  0xda   :  { %v3073_v18 = vmul.f32 -1.442695, %v4675_v17  ;;  %v4678_v19 = vpop.f32.mrb[1].mxu0 }
  0xdb   :  { %v3074_v20 = vmul.f32 -1.442695, %v4678_v19  ;;  %v4681_v21 = vpop.f32.mrb[2].mxu0  ;;  %v4687_v25 = vpop.f32.mrb[0].mxu1 }
  0xdc   :  { %3857 = vpow2.f32 %v3073_v18  ;;  %v3077_v22 = vmul.f32 -1.442695, %v4681_v21  ;;  %v4684_v23 = vpop.f32.mrb[3].mxu0  ;;  %v3075_v26 = vmul.f32 -1.442695, %v4687_v25  ;;  %v4690_v27 = vpop.f32.mrb[1].mxu1 }
  0xdd   :  { %3859 = vpow2.f32 %v3074_v20  ;;  %v3078_v24 = vmul.f32 -1.442695, %v4684_v23  ;;  %v3076_v29 = vmul.f32 -1.442695, %v4690_v27  ;;  %v4695_v30 = vpop.f32.mrb[2].mxu1 }
  0xde   :  { %3861 = vpow2.f32 %v3077_v22  ;;  %v4700_v33 = vpop.f32.mrb[3].mxu1  ;;  %v3079_v38 = vmul.f32 -1.442695, %v4695_v30 }
  0xdf   :  { %3863 = vpow2.f32 %v3078_v24 }
  0xe0   :  { %3865 = vpow2.f32 %v3075_v26 }
  0xe1   :  { %v4692_v28 = vpop.f32.mrb[4].mxu0  ;;  %3867 = vpow2.f32 %v3076_v29 }
  0xe2   :  { %v3081_v31 = vmul.f32 -1.442695, %v4692_v28  ;;  %v4698_v32 = vpop.f32.mrb[5].mxu0 }
  0xe3   :  { %v3082_v34 = vmul.f32 -1.442695, %v4698_v32  ;;  %v4703_v35 = vpop.f32.mrb[6].mxu0  ;;  %v4710_v43 = vpop.f32.mrb[4].mxu1 }
  0xe4   :  { %3869 = vpow2.f32 %v3081_v31  ;;  %v3085_v36 = vmul.f32 -1.442695, %v4703_v35  ;;  %v4706_v37 = vpop.f32.mrb[7].mxu0  ;;  %v4712_v46 = vpop.f32.mrb[5].mxu1 }
  0xe5   :  { %3871 = vpow2.f32 %v3082_v34  ;;  %v3086_v39 = vmul.f32 -1.442695, %v4706_v37  ;;  %v4716_v50 = vpop.f32.mrb[6].mxu1 }
  0xe6   :  { %v3858_v40 = vpop.eup %3857  ;;  %3873 = vpow2.f32 %v3085_v36  ;;  %v4724_v56 = vpop.f32.mrb[7].mxu1 }
  0xe7   :  { %v3860_v41 = vpop.eup %3859  ;;  %v556_v42 = vadd.f32 1.0, %v3858_v40  ;;  %3875 = vpow2.f32 %v3086_v39 }
  0xe8   :  { %v3862_v44 = vpop.eup %3861  ;;  %v557_v45 = vadd.f32 1.0, %v3860_v41  ;;  %3877 = vpow2.f32 %v3079_v38 }
  0xe9   :  { %v3864_v47 = vpop.eup %3863  ;;  %3879 = vrcp.f32 %v556_v42  ;;  %v560_v48 = vadd.f32 1.0, %v3862_v44  ;;  %v4714_v49 = vpop.f32.mrb[8].mxu0 }
  0xea   :  { %3881 = vrcp.f32 %v557_v45  ;;  %v561_v51 = vadd.f32 1.0, %v3864_v47  ;;  %v3089_v52 = vmul.f32 -1.442695, %v4714_v49  ;;  %v4719_v53 = vpop.f32.mrb[9].mxu0  ;;  %v3866_v57 = vpop.eup %3865  ;;  %v3729_v47 = vld [vmem:[%s5847_s2 + $0x200] ss:$16 sps:$4 sm:$0xff]  }
  0xeb   :  { %3883 = vrcp.f32 %v560_v48  ;;  %v3090_v54 = vmul.f32 -1.442695, %v4719_v53  ;;  %v4722_v55 = vpop.f32.mrb[10].mxu0  ;;  %v4729_v60 = vpop.eup %3867  ;;  %v558_v29 = vadd.f32 1.0, %v3866_v57 }
  0xec   :  { %3885 = vrcp.f32 %v561_v51  ;;  %v3093_v58 = vmul.f32 -1.442695, %v4722_v55  ;;  %v4727_v59 = vpop.f32.mrb[11].mxu0  ;;  %v4732_v1 = vpop.f32.mrb[8].mxu1 }
  0xed   :  { %3887 = vpow2.f32 %v3089_v52  ;;  %v3094_v61 = vmul.f32 -1.442695, %v4727_v59  ;;  %v4734_v4 = vpop.f32.mrb[9].mxu1  ;;  %v3737_v52 = vld [vmem:[%s5847_s2 + $0x224] ss:$16 sps:$4 sm:$0xff]  }
  0xee   :  { %v3870_v62 = vpop.eup %3869  ;;  %3889 = vpow2.f32 %v3090_v54  ;;  %v4738_v8 = vpop.f32.mrb[10].mxu1 }
  0xef   :  { %v3872_v63 = vpop.eup %3871  ;;  %v564_v0 = vadd.f32 1.0, %v3870_v62  ;;  %3891 = vpow2.f32 %v3093_v58  ;;  %v4748_v16 = vpop.f32.mrb[11].mxu1 }
  0xf0   :  { %v3874_v2 = vpop.eup %3873  ;;  %v565_v3 = vadd.f32 1.0, %v3872_v63  ;;  %3893 = vpow2.f32 %v3094_v61  ;;  %v3740_v63 = vld [vmem:[%s5847_s2 + $0x22c] ss:$16 sps:$4 sm:$0xff]  }
  0xf1   :  { %v3876_v5 = vpop.eup %3875  ;;  %3895 = vrcp.f32 %v564_v0  ;;  %v568_v6 = vadd.f32 1.0, %v3874_v2  ;;  %v4736_v7 = vpop.f32.mrb[12].mxu0 }
  0xf2   :  { %v4740_v9 = vpop.eup %3877  ;;  %3897 = vrcp.f32 %v565_v3  ;;  %v569_v10 = vadd.f32 1.0, %v3876_v5  ;;  %v3097_v11 = vmul.f32 -1.442695, %v4736_v7  ;;  %v4743_v12 = vpop.f32.mrb[13].mxu0 }
  0xf3   :  { %v3880_v13 = vpop.eup %3879  ;;  %3899 = vrcp.f32 %v568_v6  ;;  %v3098_v14 = vmul.f32 -1.442695, %v4743_v12  ;;  %v4746_v15 = vpop.f32.mrb[14].mxu0 }
  0xf4   :  { %v3882_v18 = vpop.eup %3881  ;;  %3901 = vrcp.f32 %v569_v10  ;;  %v3101_v20 = vmul.f32 -1.442695, %v4746_v15  ;;  %v4751_v22 = vpop.f32.mrb[15].mxu0  ;;  %v748_v34 = vmul.f32 %v3880_v13, %v4675_v17  ;;  %v3732_v17 = vld [vmem:[%s5847_s2 + $0x208] ss:$16 sps:$4 sm:$0xff]  }
  0xf5   :  { %v3884_v24 = vpop.eup %3883  ;;  %3903 = vpow2.f32 %v3097_v11  ;;  %v3102_v26 = vmul.f32 -1.442695, %v4751_v22  ;;  %v749_v39 = vmul.f32 %v3882_v18, %v4678_v19  ;;  %v4758_v41 = vpop.f32.mrb[12].mxu1 }
  0xf6   :  { %v3886_v31 = vpop.eup %3885  ;;  %v752_v36 = vmul.f32 %v3884_v24, %v4681_v21  ;;  %3905 = vpow2.f32 %v3098_v14  ;;  %v4766_v21 = vpop.f32.mrb[13].mxu1  ;;  %v3738_v24 = vld [vmem:[%s5847_s2 + $0x228] ss:$16 sps:$4 sm:$0xff]  }
  0xf7   :  { %v3888_v38 = vpop.eup %3887  ;;  %v753_v40 = vmul.f32 %v3886_v31, %v4684_v23  ;;  %3907 = vpow2.f32 %v3101_v20  ;;  %v4773_v54 = vpop.f32.mrb[14].mxu1  ;;  %v3735_v20 = vld [vmem:[%s5847_s2 + $0x220] ss:$16 sps:$4 sm:$0xff]  }
  0xf8   :  { %v3890_v42 = vpop.eup %3889  ;;  %v812_v44 = vpack.c.bf16 %v752_v36, %v748_v34  ;;  %v572_v45 = vadd.f32 1.0, %v3888_v38  ;;  %3909 = vpow2.f32 %v3102_v26  ;;  %v4784_v6 = vpop.f32.mrb[15].mxu1  ;;  %v3743_v34 = vld [vmem:[%s5847_s2 + $0x244] ss:$16 sps:$4 sm:$0xff]   ;;  %v3746_v36 = vld [vmem:[%s5847_s2 + $0x24c] ss:$16 sps:$4 sm:$0xff]  }
  0xf9   :  { %v3892_v19 = vpop.eup %3891  ;;  %v813_v48 = vpack.c.bf16 %v753_v40, %v749_v39  ;;  %v573_v23 = vadd.f32 1.0, %v3890_v42  ;;  %v4768_v51 = vpop.f32.mrb[16].mxu0  ;;  %3911 = vrcp.f32 %v558_v29 }
  0xfa   :  { %v3894_v57 = vpop.eup %3893  ;;  %3913 = vrcp.f32 %v572_v45  ;;  %v576_v58 = vadd.f32 1.0, %v3892_v19  ;;  %v3105_v61 = vmul.f32 -1.442695, %v4768_v51  ;;  %v4776_v62 = vpop.f32.mrb[17].mxu0  ;;  %v3741_v45 = vld [vmem:[%s5847_s2 + $0x240] ss:$16 sps:$4 sm:$0xff]  }
  0xfb   :  { %v3896_v0 = vpop.eup %3895  ;;  %3915 = vrcp.f32 %v573_v23  ;;  %v577_v2 = vadd.f32 1.0, %v3894_v57  ;;  %v3106_v3 = vmul.f32 -1.442695, %v4776_v62  ;;  %v4782_v5 = vpop.f32.mrb[18].mxu0  ;;  %1666 = vmatprep.mubr.bf16.mxu0 %v813_v48  ;;  %1892 = vmatprep.mubr.bf16.mxu1 %v813_v48  ;;  %v3749_v23 = vld [vmem:[%s5847_s2 + $0x264] ss:$16 sps:$4 sm:$0xff]  }
  0xfc   :  { %v3898_v10 = vpop.eup %3897  ;;  %3917 = vrcp.f32 %v576_v58  ;;  %v3109_v11 = vmul.f32 -1.442695, %v4782_v5  ;;  %v4787_v13 = vpop.f32.mrb[19].mxu0  ;;  %1667 = vmatmul.mubr.bf16.vlgmr.msra.gmra.mrb[32].mxu0 %v812_v44  ;;  %1893 = vmatmul.mubr.bf16.vlgmr.msra.gmra.mrb[32].mxu1 %v812_v44  ;;  %v756_v29 = vmul.f32 %v3896_v0, %v4692_v28  ;;  %v3752_v0 = vld [vmem:[%s5847_s2 + $0x26c] ss:$16 sps:$4 sm:$0xff]  }
  0xfd   :  { %v3900_v14 = vpop.eup %3899  ;;  %3919 = vrcp.f32 %v577_v2  ;;  %v3110_v18 = vmul.f32 -1.442695, %v4787_v13  ;;  %1748 = vmatpush1.bf16.msra.mxu0 %v3729_v47  ;;  %1974 = vmatpush1.bf16.msra.mxu1 %v3732_v17  ;;  %v757_v39 = vmul.f32 %v3898_v10, %v4698_v32  ;;  %v4806_v28 = vpop.f32.mrb[16].mxu1  ;;  %v3744_v47 = vld [vmem:[%s5847_s2 + $0x248] ss:$16 sps:$4 sm:$0xff]   ;;  %v562_v10 = vadd.f32 1.0, %v4740_v9 }
  0xfe   :  { %v3902_v26 = vpop.eup %3901  ;;  %v760_v31 = vmul.f32 %v3900_v14, %v4703_v35  ;;  %3921 = vpow2.f32 %v3105_v61  ;;  %1749 = vmatprep.subr.bf16.mxu0 %v3737_v52  ;;  %1975 = vmatprep.subr.bf16.mxu1 %v3740_v63  ;;  %v4814_v17 = vpop.f32.mrb[17].mxu1  ;;  %v559_v61 = vadd.f32 1.0, %v4729_v60  ;;  %v3747_v9 = vld [vmem:[%s5847_s2 + $0x260] ss:$16 sps:$4 sm:$0xff]  }
  0xff   :  { %v3904_v38 = vpop.eup %3903  ;;  %v761_v40 = vmul.f32 %v3902_v26, %v4706_v37  ;;  %3923 = vpow2.f32 %v3106_v3  ;;  %v4821_v52 = vpop.f32.mrb[18].mxu1 }
 0x100   :  { %v3906_v35 = vpop.eup %3905  ;;  %v816_v42 = vpack.c.bf16 %v760_v31, %v756_v29  ;;  %v580_v44 = vadd.f32 1.0, %v3904_v38  ;;  %3925 = vpow2.f32 %v3109_v11  ;;  %v4834_v14 = vpop.f32.mrb[19].mxu1  ;;  %v3750_v29 = vld [vmem:[%s5847_s2 + $0x268] ss:$16 sps:$4 sm:$0xff]   ;;  %v3758_v38 = vld [vmem:[%s5847_s2 + $0x28c] ss:$16 sps:$4 sm:$0xff]  }
 0x101   :  { %v3908_v32 = vpop.eup %3907  ;;  %v817_v19 = vpack.c.bf16 %v761_v40, %v757_v39  ;;  %v581_v37 = vadd.f32 1.0, %v3906_v35  ;;  %3927 = vpow2.f32 %v3110_v18  ;;  %1750 = vmatpush1.bf16.msra.mxu0 %v3735_v20  ;;  %v4816_v48 = vpop.f32.mrb[20].mxu0  ;;  %1976 = vmatpush1.bf16.msra.mxu1 %v3738_v24  ;;  %v3080_v18 = vmul.f32 -1.442695, %v4700_v33 }
 0x102   :  { %v3910_v57 = vpop.eup %3909  ;;  %3929 = vrcp.f32 %v580_v44  ;;  %v584_v58 = vadd.f32 1.0, %v3908_v32  ;;  %v4824_v63 = vpop.f32.mrb[21].mxu0  ;;  %1751 = vmatprep.subr.bf16.mxu0 %v3743_v34  ;;  %1977 = vmatprep.subr.bf16.mxu1 %v3746_v36  ;;  %v3113_v26 = vmul.f32 -1.442695, %v4816_v48  ;;  %v3755_v36 = vld [vmem:[%s5847_s2 + $0x284] ss:$16 sps:$4 sm:$0xff]  }
 0x103   :  { %v4829_v2 = vpop.eup %3911  ;;  %3931 = vrcp.f32 %v581_v37  ;;  %v585_v3 = vadd.f32 1.0, %v3910_v57  ;;  %v4832_v11 = vpop.f32.mrb[22].mxu0  ;;  %1676 = vmatprep.mubr.bf16.mxu0 %v817_v19  ;;  %1902 = vmatprep.mubr.bf16.mxu1 %v817_v19  ;;  %v3114_v34 = vmul.f32 -1.442695, %v4824_v63  ;;  %v3753_v32 = vld [vmem:[%s5847_s2 + $0x280] ss:$16 sps:$4 sm:$0xff]  }
 0x104   :  { %v3914_v60 = vpop.eup %3913  ;;  %3933 = vrcp.f32 %v584_v58  ;;  %v4837_v20 = vpop.f32.mrb[23].mxu0  ;;  %1677 = vmatmul.mubr.bf16.gmra.mrb[36].mxu0 %v816_v42  ;;  %1903 = vmatmul.mubr.bf16.gmra.mrb[36].mxu1 %v816_v42  ;;  %v3756_v19 = vld [vmem:[%s5847_s2 + $0x288] ss:$16 sps:$4 sm:$0xff]  }
 0x105   :  { %v3916_v24 = vpop.eup %3915  ;;  %3935 = vrcp.f32 %v585_v3  ;;  %1752 = vmatpush1.bf16.msra.mxu0 %v3741_v45  ;;  %1978 = vmatpush1.bf16.msra.mxu1 %v3744_v47  ;;  %v764_v40 = vmul.f32 %v3914_v60, %v4714_v49  ;;  %v4855_v42 = vpop.f32.mrb[20].mxu1 }
 0x106   :  { %v3918_v31 = vpop.eup %3917  ;;  %3937 = vrcp.f32 %v559_v61  ;;  %1753 = vmatprep.subr.bf16.mxu0 %v3749_v23  ;;  %1979 = vmatprep.subr.bf16.mxu1 %v3752_v0  ;;  %v765_v45 = vmul.f32 %v3916_v24, %v4719_v53  ;;  %v4865_v49 = vpop.f32.mrb[21].mxu1  ;;  %v3761_v53 = vld [vmem:[%s5847_s2 + $0x2a4] ss:$16 sps:$4 sm:$0xff]  }
 0x107   :  { %v3920_v39 = vpop.eup %3919  ;;  %v768_v35 = vmul.f32 %v3918_v31, %v4722_v55  ;;  %3939 = vrcp.f32 %v562_v10  ;;  %v4875_v58 = vpop.f32.mrb[22].mxu1  ;;  %v3083_v10 = vmul.f32 -1.442695, %v4710_v43 }
 0x108   :  { %v3922_v44 = vpop.eup %3921  ;;  %v769_v47 = vmul.f32 %v3920_v39, %v4727_v59  ;;  %3941 = vpow2.f32 %v3080_v18  ;;  %v3764_v59 = vld [vmem:[%s5847_s2 + $0x2ac] ss:$16 sps:$4 sm:$0xff]   ;;  %5862 = vst [vmem:[#allocation2_spill] sm:$0xff] %v4875_v58  ;;  %v4880_v18 = vpop.f32.mrb[23].mxu1 }
 0x109   :  { %v3924_v55 = vpop.eup %3923  ;;  %v820_v37 = vpack.c.bf16 %v768_v35, %v764_v40  ;;  %v588_v23 = vadd.f32 1.0, %v3922_v44  ;;  %3943 = vpow2.f32 %v3113_v26  ;;  %1754 = vmatpush1.bf16.msra.mxu0 %v3747_v9  ;;  %v4867_v57 = vpop.f32.mrb[24].mxu0  ;;  %1980 = vmatpush1.bf16.msra.mxu1 %v3750_v29  ;;  %5863 = vst [vmem:[#allocation3_spill] sm:$0xff] %v4880_v18  ;;  %v3117_v9 = vmul.f32 -1.442695, %v4832_v11 }
 0x10a   :  { %v3926_v61 = vpop.eup %3925  ;;  %v821_v0 = vpack.c.bf16 %v769_v47, %v765_v45  ;;  %v589_v3 = vadd.f32 1.0, %v3924_v55  ;;  %3945 = vpow2.f32 %v3114_v34  ;;  %v4878_v60 = vpop.f32.mrb[25].mxu0  ;;  %1755 = vmatprep.subr.bf16.mxu0 %v3755_v36  ;;  %1981 = vmatprep.subr.bf16.mxu1 %v3758_v38  ;;  %v3084_v29 = vmul.f32 -1.442695, %v4712_v46  ;;  %v3759_v38 = vld [vmem:[%s5847_s2 + $0x2a0] ss:$16 sps:$4 sm:$0xff]  }
 0x10b   :  { %v3928_v24 = vpop.eup %3927  ;;  %3947 = vrcp.f32 %v588_v23  ;;  %v592_v26 = vadd.f32 1.0, %v3926_v61  ;;  %v4884_v31 = vpop.f32.mrb[26].mxu0  ;;  %v3118_v40 = vmul.f32 -1.442695, %v4837_v20  ;;  %v3087_v35 = vmul.f32 -1.442695, %v4716_v50 }
 0x10c   :  { %v3930_v39 = vpop.eup %3929  ;;  %3949 = vrcp.f32 %v589_v3  ;;  %v593_v34 = vadd.f32 1.0, %v3928_v24  ;;  %1686 = vmatprep.mubr.bf16.mxu0 %v821_v0  ;;  %1912 = vmatprep.mubr.bf16.mxu1 %v821_v0  ;;  %v4888_v36 = vpop.f32.mrb[27].mxu0  ;;  %v3762_v44 = vld [vmem:[%s5847_s2 + $0x2a8] ss:$16 sps:$4 sm:$0xff]   ;;  %v3088_v47 = vmul.f32 -1.442695, %v4724_v56 }
 0x10d   :  { %v3932_v45 = vpop.eup %3931  ;;  %3951 = vrcp.f32 %v592_v26  ;;  %1687 = vmatmul.mubr.bf16.gmra.mrb[40].mxu0 %v820_v37  ;;  %1913 = vmatmul.mubr.bf16.gmra.mrb[40].mxu1 %v820_v37  ;;  %v3767_v55 = vld [vmem:[%s5847_s2 + $0x2c4] ss:$16 sps:$4 sm:$0xff]   ;;  %v3770_v23 = vld [vmem:[%s5847_s2 + $0x2cc] ss:$16 sps:$4 sm:$0xff]   ;;  %v4904_v0 = vmul.f32 -1.442695, %v4732_v1  ;;  %v772_v24 = vmul.f32 %v3930_v39, %v4736_v7 }
 0x10e   :  { %v3934_v61 = vpop.eup %3933  ;;  %3953 = vrcp.f32 %v593_v34  ;;  %1756 = vmatpush1.bf16.msra.mxu0 %v3753_v32  ;;  %1982 = vmatpush1.bf16.msra.mxu1 %v3756_v19  ;;  %v4908_v26 = vpop.f32.mrb[24].mxu1  ;;  %v773_v58 = vmul.f32 %v3932_v45, %v4743_v12  ;;  %v750_v32 = vmul.f32 %v4829_v2, %v4687_v25  ;;  %v3765_v7 = vld [vmem:[%s5847_s2 + $0x2c0] ss:$16 sps:$4 sm:$0xff]   ;;  %v4925_v12 = vmul.f32 -1.442695, %v4734_v4 }
 0x10f   :  { %v3936_v3 = vpop.eup %3935  ;;  %v776_v37 = vmul.f32 %v3934_v61, %v4746_v15  ;;  %3955 = vpow2.f32 %v3117_v9  ;;  %1757 = vmatprep.subr.bf16.mxu0 %v3761_v53  ;;  %1983 = vmatprep.subr.bf16.mxu1 %v3764_v59  ;;  %5864 = vst [vmem:[#allocation4_spill] sm:$0xff] %v4908_v26  ;;  %v3768_v15 = vld [vmem:[%s5847_s2 + $0x2c8] ss:$16 sps:$4 sm:$0xff]   ;;  %v4922_v19 = vpop.f32.mrb[25].mxu1  ;;  %v3773_v25 = vld [vmem:[%s5847_s2 + $0x2e4] ss:$16 sps:$4 sm:$0xff]  }
 0x110   :  { %v4910_v18 = vpop.eup %3937  ;;  %v777_v34 = vmul.f32 %v3936_v3, %v4751_v22  ;;  %3957 = vpow2.f32 %v3118_v40  ;;  %5865 = vst [vmem:[#allocation5_spill] sm:$0xff] %v4922_v19  ;;  %v4932_v2 = vpop.f32.mrb[26].mxu1  ;;  %v4936_v45 = vmul.f32 -1.442695, %v4738_v8  ;;  %v3776_v61 = vld [vmem:[%s5847_s2 + $0x2ec] ss:$16 sps:$4 sm:$0xff]  }
 0x111   :  { %v3940_v53 = vpop.eup %3939  ;;  %v824_v59 = vpack.c.bf16 %v776_v37, %v772_v24  ;;  %3959 = vpow2.f32 %v3083_v10  ;;  %v4927_v22 = vpop.f32.mrb[28].mxu0  ;;  %5866 = vst [vmem:[#allocation6_spill] sm:$0xff] %v4932_v2  ;;  %v4975_v19 = vmul.f32 -1.442695, %v4758_v41 }
 0x112   :  { %v3942_v9 = vpop.eup %3941  ;;  %v825_v39 = vpack.c.bf16 %v777_v34, %v773_v58  ;;  %v754_v40 = vmul.f32 %v3940_v53, %v4695_v30  ;;  %3961 = vpow2.f32 %v3084_v29  ;;  %1758 = vmatpush1.bf16.msra.mxu0 %v3759_v38  ;;  %1984 = vmatpush1.bf16.msra.mxu1 %v3762_v44  ;;  %v4938_v10 = vpop.f32.mrb[29].mxu0  ;;  %v3121_v58 = vmul.f32 -1.442695, %v4867_v57 }
 0x113   :  { %v4943_v3 = vpop.f32.mrb[27].mxu1  ;;  %v3944_v24 = vpop.eup %3943  ;;  %v563_v37 = vadd.f32 1.0, %v3942_v9  ;;  %3963 = vpow2.f32 %v3087_v35  ;;  %v4947_v30 = vmul.f32 -1.442695, %v4748_v16  ;;  %1759 = vmatprep.subr.bf16.mxu0 %v3767_v55  ;;  %1985 = vmatprep.subr.bf16.mxu1 %v3770_v23  ;;  %v3122_v53 = vmul.f32 -1.442695, %v4878_v60 }
 0x114   :  { %5867 = vst [vmem:[#allocation7_spill] sm:$0xff] %v4943_v3  ;;  %v4949_v29 = vpop.f32.mrb[30].mxu0  ;;  %v3946_v38 = vpop.eup %3945  ;;  %v4951_v44 = vpack.c.bf16 %v754_v40, %v750_v32  ;;  %v596_v34 = vadd.f32 1.0, %v3944_v24  ;;  %3965 = vpow2.f32 %v3088_v47  ;;  %1696 = vmatprep.mubr.bf16.mxu0 %v825_v39  ;;  %1922 = vmatprep.mubr.bf16.mxu1 %v825_v39  ;;  %v3771_v35 = vld [vmem:[%s5847_s2 + $0x2e0] ss:$16 sps:$4 sm:$0xff]  }
 0x115   :  { %v4954_v9 = vpop.f32.mrb[31].mxu0  ;;  %v3774_v55 = vld [vmem:[%s5847_s2 + $0x2e8] ss:$16 sps:$4 sm:$0xff]   ;;  %v3948_v23 = vpop.eup %3947  ;;  %3967 = vrcp.f32 %v563_v37  ;;  %v597_v32 = vadd.f32 1.0, %v3946_v38  ;;  %v3125_v40 = vmul.f32 -1.442695, %v4884_v31  ;;  %1697 = vmatmul.mubr.bf16.gmra.mrb[44].mxu0 %v824_v59  ;;  %1923 = vmatmul.mubr.bf16.gmra.mrb[44].mxu1 %v824_v59 }
 0x116   :  { %5868 = vst [vmem:[#allocation8_spill] sm:$0xff] %v4951_v44  ;;  %v3126_v47 = vmul.f32 -1.442695, %v4888_v36  ;;  %v3779_v39 = vld [vmem:[%s5847_s2 + $0x304] ss:$16 sps:$4 sm:$0xff]   ;;  %v3950_v44 = vpop.eup %3949  ;;  %3969 = vrcp.f32 %v596_v34  ;;  %1760 = vmatpush1.bf16.msra.mxu0 %v3765_v7  ;;  %1986 = vmatpush1.bf16.msra.mxu1 %v3768_v15  ;;  %v4970_v38 = vpop.f32.mrb[28].mxu1  ;;  %v780_v59 = vmul.f32 %v3948_v23, %v4768_v51 }
 0x117   :  { %v3782_v24 = vld [vmem:[%s5847_s2 + $0x30c] ss:$16 sps:$4 sm:$0xff]   ;;  %v3952_v37 = vpop.eup %3951  ;;  %3971 = vrcp.f32 %v597_v32  ;;  %1761 = vmatprep.subr.bf16.mxu0 %v3773_v25  ;;  %1987 = vmatprep.subr.bf16.mxu1 %v3776_v61  ;;  %v4977_v26 = vpop.f32.mrb[29].mxu1  ;;  %v781_v7 = vmul.f32 %v3950_v44, %v4776_v62  ;;  %v4982_v25 = vmul.f32 -1.442695, %v4766_v21 }
 0x118   :  { %v3954_v3 = vpop.eup %3953  ;;  %v784_v2 = vmul.f32 %v3952_v37, %v4782_v5  ;;  %3973 = vpow2.f32 %v3121_v58  ;;  %v3777_v51 = vld [vmem:[%s5847_s2 + $0x300] ss:$16 sps:$4 sm:$0xff]   ;;  %v3780_v5 = vld [vmem:[%s5847_s2 + $0x308] ss:$16 sps:$4 sm:$0xff]   ;;  %v4990_v61 = vpop.f32.mrb[30].mxu1 }
 0x119   :  { %v3956_v34 = vpop.eup %3955  ;;  %v785_v15 = vmul.f32 %v3954_v3, %v4787_v13  ;;  %3975 = vpow2.f32 %v3122_v53  ;;  %v4993_v62 = vmul.f32 -1.442695, %v4773_v54  ;;  %v3785_v13 = vld [vmem:[%s5847_s2 + $0x324] ss:$16 sps:$4 sm:$0xff]   ;;  %v3788_v3 = vld [vmem:[%s5847_s2 + $0x32c] ss:$16 sps:$4 sm:$0xff]  }
 0x11a   :  { %v3958_v58 = vpop.eup %3957  ;;  %v828_v23 = vpack.c.bf16 %v784_v2, %v780_v59  ;;  %v600_v32 = vadd.f32 1.0, %v3956_v34  ;;  %3977 = vpow2.f32 %v3125_v40  ;;  %1762 = vmatpush1.bf16.msra.mxu0 %v3771_v35  ;;  %1988 = vmatpush1.bf16.msra.mxu1 %v3774_v55  ;;  %v5001_v44 = vpop.f32.mrb[31].mxu1  ;;  %v5004_v40 = vmul.f32 -1.442695, %v4927_v22 }
 0x11b   :  { %5869 = vst [vmem:[#allocation9_spill] sm:$0xff] %v5001_v44  ;;  %v3960_v53 = vpop.eup %3959  ;;  %v829_v37 = vpack.c.bf16 %v785_v15, %v781_v7  ;;  %v601_v2 = vadd.f32 1.0, %v3958_v58  ;;  %3979 = vpow2.f32 %v3126_v47  ;;  %1763 = vmatprep.subr.bf16.mxu0 %v3779_v39  ;;  %1989 = vmatprep.subr.bf16.mxu1 %v3782_v24  ;;  %v3783_v44 = vld [vmem:[%s5847_s2 + $0x320] ss:$16 sps:$4 sm:$0xff]   ;;  %v3786_v47 = vld [vmem:[%s5847_s2 + $0x328] ss:$16 sps:$4 sm:$0xff]   ;;  %v751_v39 = vmul.f32 %v4910_v18, %v4690_v27 }
 0x11c   :  { %v3962_v35 = vpop.eup %3961  ;;  %3981 = vrcp.f32 %v600_v32  ;;  %v566_v55 = vadd.f32 1.0, %v3960_v53  ;;  %v3791_v15 = vld [vmem:[%s5847_s2 + $0x344] ss:$16 sps:$4 sm:$0xff]   ;;  %v3794_v58 = vld [vmem:[%s5847_s2 + $0x34c] ss:$16 sps:$4 sm:$0xff]  }
 0x11d   :  { %v3964_v59 = vpop.eup %3963  ;;  %3983 = vrcp.f32 %v601_v2  ;;  %v567_v34 = vadd.f32 1.0, %v3962_v35  ;;  %1706 = vmatprep.mubr.bf16.mxu0 %v829_v37  ;;  %1932 = vmatprep.mubr.bf16.mxu1 %v829_v37  ;;  %v3789_v2 = vld [vmem:[%s5847_s2 + $0x340] ss:$16 sps:$4 sm:$0xff]   ;;  %v3792_v35 = vld [vmem:[%s5847_s2 + $0x348] ss:$16 sps:$4 sm:$0xff]  }
 0x11e   :  { %v3966_v7 = vpop.eup %3965  ;;  %3985 = vrcp.f32 %v566_v55  ;;  %v570_v24 = vadd.f32 1.0, %v3964_v59  ;;  %1707 = vmatmul.mubr.bf16.gmra.mrb[48].mxu0 %v828_v23  ;;  %1933 = vmatmul.mubr.bf16.gmra.mrb[48].mxu1 %v828_v23  ;;  %v3130_v23 = vmul.f32 -1.442695, %v4938_v10  ;;  %v3800_v55 = vld [vmem:[%s5847_s2 + $0x36c] ss:$16 sps:$4 sm:$0xff]  }
 0x11f   :  { %v3968_v32 = vpop.eup %3967  ;;  %3987 = vrcp.f32 %v567_v34  ;;  %v571_v53 = vadd.f32 1.0, %v3966_v7  ;;  %1764 = vmatpush1.bf16.msra.mxu0 %v3777_v51  ;;  %1990 = vmatpush1.bf16.msra.mxu1 %v3780_v5 }
 0x120   :  { %v3970_v37 = vpop.eup %3969  ;;  %v755_v27 = vmul.f32 %v3968_v32, %v4700_v33  ;;  %3989 = vrcp.f32 %v570_v24  ;;  %1765 = vmatprep.subr.bf16.mxu0 %v3785_v13  ;;  %1991 = vmatprep.subr.bf16.mxu1 %v3788_v3  ;;  %v3133_v33 = vmul.f32 -1.442695, %v4949_v29  ;;  %v3134_v13 = vmul.f32 -1.442695, %v4954_v9  ;;  %v3797_v3 = vld [vmem:[%s5847_s2 + $0x364] ss:$16 sps:$4 sm:$0xff]  }
 0x121   :  { %v3972_v18 = vpop.eup %3971  ;;  %3991 = vrcp.f32 %v571_v53  ;;  %v3795_v32 = vld [vmem:[%s5847_s2 + $0x360] ss:$16 sps:$4 sm:$0xff]   ;;  %v3798_v53 = vld [vmem:[%s5847_s2 + $0x368] ss:$16 sps:$4 sm:$0xff]  }
 0x122   :  { %v3974_v51 = vpop.eup %3973  ;;  %v5028_v5 = vpack.c.bf16 %v755_v27, %v751_v39  ;;  %3993 = vpow2.f32 %v4904_v0  ;;  %v788_v27 = vmul.f32 %v3970_v37, %v4816_v48  ;;  %v3806_v48 = vld [vmem:[%s5847_s2 + $0x38c] ss:$16 sps:$4 sm:$0xff]  }
 0x123   :  { %v3976_v59 = vpop.eup %3975  ;;  %v604_v34 = vadd.f32 1.0, %v3974_v51  ;;  %3995 = vpow2.f32 %v4925_v12  ;;  %1766 = vmatpush1.bf16.msra.mxu0 %v3783_v44  ;;  %1992 = vmatpush1.bf16.msra.mxu1 %v3786_v47 }
 0x124   :  { %v3978_v7 = vpop.eup %3977  ;;  %v605_v0 = vadd.f32 1.0, %v3976_v59  ;;  %3997 = vpow2.f32 %v4936_v45  ;;  %1767 = vmatprep.subr.bf16.mxu0 %v3791_v15  ;;  %1993 = vmatprep.subr.bf16.mxu1 %v3794_v58  ;;  %v789_v58 = vmul.f32 %v3972_v18, %v4824_v63  ;;  %v3803_v59 = vld [vmem:[%s5847_s2 + $0x384] ss:$16 sps:$4 sm:$0xff]   ;;  %v3801_v63 = vld [vmem:[%s5847_s2 + $0x380] ss:$16 sps:$4 sm:$0xff]  }
 0x125   :  { %v3980_v39 = vpop.eup %3979  ;;  %3999 = vrcp.f32 %v604_v34  ;;  %v608_v24 = vadd.f32 1.0, %v3978_v7 }
 0x126   :  { %v3982_v12 = vpop.eup %3981  ;;  %4001 = vrcp.f32 %v605_v0  ;;  %v609_v44 = vadd.f32 1.0, %v3980_v39 }
 0x127   :  { %v3984_v47 = vpop.eup %3983  ;;  %v792_v45 = vmul.f32 %v3982_v12, %v4832_v11  ;;  %4003 = vrcp.f32 %v608_v24  ;;  %1768 = vmatpush1.bf16.msra.mxu0 %v3789_v2  ;;  %1994 = vmatpush1.bf16.msra.mxu1 %v3792_v35  ;;  %v3104_v12 = vmul.f32 -1.442695, %v4784_v6 }
 0x128   :  { %v3986_v15 = vpop.eup %3985  ;;  %v793_v51 = vmul.f32 %v3984_v47, %v4837_v20  ;;  %4005 = vrcp.f32 %v609_v44  ;;  %1769 = vmatprep.subr.bf16.mxu0 %v3797_v3  ;;  %1995 = vmatprep.subr.bf16.mxu1 %v3800_v55  ;;  %v3804_v20 = vld [vmem:[%s5847_s2 + $0x388] ss:$16 sps:$4 sm:$0xff]   ;;  %v3815_v44 = vld [vmem:[%s5847_s2 + $0x3c4] ss:$16 sps:$4 sm:$0xff]  }
 0x129   :  { %v3988_v11 = vpop.eup %3987  ;;  %v832_v37 = vpack.c.bf16 %v792_v45, %v788_v27  ;;  %v758_v2 = vmul.f32 %v3986_v15, %v4710_v43  ;;  %4007 = vpow2.f32 %v4947_v30  ;;  %v3809_v43 = vld [vmem:[%s5847_s2 + $0x3a4] ss:$16 sps:$4 sm:$0xff]   ;;  %v3812_v30 = vld [vmem:[%s5847_s2 + $0x3ac] ss:$16 sps:$4 sm:$0xff]   ;;  %v3107_v27 = vmul.f32 -1.442695, %v4806_v28 }
 0x12a   :  { %v3990_v18 = vpop.eup %3989  ;;  %v833_v35 = vpack.c.bf16 %v793_v51, %v789_v58  ;;  %v759_v3 = vmul.f32 %v3988_v11, %v4712_v46  ;;  %4009 = vpow2.f32 %v5004_v40 }
 0x12b   :  { %v3992_v55 = vpop.eup %3991  ;;  %v762_v34 = vmul.f32 %v3990_v18, %v4716_v50  ;;  %4011 = vpow2.f32 %v3130_v23  ;;  %1770 = vmatpush1.bf16.msra.mxu0 %v3795_v32  ;;  %1996 = vmatpush1.bf16.msra.mxu1 %v3798_v53  ;;  %v3807_v50 = vld [vmem:[%s5847_s2 + $0x3a0] ss:$16 sps:$4 sm:$0xff]   ;;  %v3810_v23 = vld [vmem:[%s5847_s2 + $0x3a8] ss:$16 sps:$4 sm:$0xff]   ;;  %v3824_v18 = vld [vmem:[%s5847_s2 + $0x3ec] ss:$16 sps:$4 sm:$0xff]  }
 0x12c   :  { %v3994_v7 = vpop.eup %3993  ;;  %v763_v0 = vmul.f32 %v3992_v55, %v4724_v56  ;;  %4013 = vpow2.f32 %v3133_v33  ;;  %1716 = vmatprep.mubr.bf16.mxu0 %v833_v35  ;;  %1942 = vmatprep.mubr.bf16.mxu1 %v833_v35  ;;  %v3108_v55 = vmul.f32 -1.442695, %v4814_v17 }
 0x12d   :  { %v3996_v46 = vpop.eup %3995  ;;  %v5075_v40 = vpack.c.bf16 %v762_v34, %v758_v2  ;;  %v574_v39 = vadd.f32 1.0, %v3994_v7  ;;  %4015 = vpow2.f32 %v3134_v13  ;;  %1717 = vmatmul.mubr.bf16.gmra.mrb[52].mxu0 %v832_v37  ;;  %1943 = vmatmul.mubr.bf16.gmra.mrb[52].mxu1 %v832_v37  ;;  %v3819_v34 = vld [vmem:[%s5847_s2 + $0x3e0] ss:$16 sps:$4 sm:$0xff]  }
 0x12e   :  { %v3998_v24 = vpop.eup %3997  ;;  %v5083_v56 = vpack.c.bf16 %v763_v0, %v759_v3  ;;  %v575_v33 = vadd.f32 1.0, %v3996_v46  ;;  %4017 = vpow2.f32 %v4975_v19  ;;  %1771 = vmatprep.subr.bf16.mxu0 %v3803_v59  ;;  %1997 = vmatprep.subr.bf16.mxu1 %v3806_v48  ;;  %v3818_v19 = vld [vmem:[%s5847_s2 + $0x3cc] ss:$16 sps:$4 sm:$0xff]   ;;  %v3111_v46 = vmul.f32 -1.442695, %v4821_v52 }
 0x12f   :  { %v4000_v32 = vpop.eup %3999  ;;  %4019 = vrcp.f32 %v574_v39  ;;  %v578_v13 = vadd.f32 1.0, %v3998_v24  ;;  %1772 = vmatpush1.bf16.msra.mxu0 %v3801_v63  ;;  %1998 = vmatpush1.bf16.msra.mxu1 %v3804_v20  ;;  %v3821_v20 = vld [vmem:[%s5847_s2 + $0x3e4] ss:$16 sps:$4 sm:$0xff]   ;;  %v3822_v39 = vld [vmem:[%s5847_s2 + $0x3e8] ss:$16 sps:$4 sm:$0xff]  }
 0x130   :  { %v4002_v53 = vpop.eup %4001  ;;  %4021 = vrcp.f32 %v575_v33  ;;  %1773 = vmatprep.subr.bf16.mxu0 %v3809_v43  ;;  %1999 = vmatprep.subr.bf16.mxu1 %v3812_v30  ;;  %v796_v15 = vmul.f32 %v4000_v32, %v4867_v57  ;;  %v3112_v24 = vmul.f32 -1.442695, %v4834_v14  ;;  %v3825_v33 = vld [vmem:[%s5848_s4 + $0x40] sm:$0xff]  }
 0x131   :  { %v4004_v47 = vpop.eup %4003  ;;  %4023 = vrcp.f32 %v578_v13  ;;  %v797_v59 = vmul.f32 %v4002_v53, %v4878_v60  ;;  %v3813_v60 = vld [vmem:[%s5847_s2 + $0x3c0] ss:$16 sps:$4 sm:$0xff]  }
 0x132   :  { %v4006_v45 = vpop.eup %4005  ;;  %v800_v58 = vmul.f32 %v4004_v47, %v4884_v31  ;;  %4025 = vpow2.f32 %v4982_v25  ;;  %v3827_v32 = vld [vmem:[%s5848_s4 + $0xc0] sm:$0xff]  }
 0x133   :  { %v4008_v51 = vpop.eup %4007  ;;  %v801_v48 = vmul.f32 %v4006_v45, %v4888_v36  ;;  %4027 = vpow2.f32 %v4993_v62  ;;  %1774 = vmatpush1.bf16.msra.mxu0 %v3807_v50  ;;  %2000 = vmatpush1.bf16.msra.mxu1 %v3810_v23  ;;  %v3816_v36 = vld [vmem:[%s5847_s2 + $0x3c8] ss:$16 sps:$4 sm:$0xff]  }
 0x134   :  { %v4010_v11 = vpop.eup %4009  ;;  %v836_v37 = vpack.c.bf16 %v800_v58, %v796_v15  ;;  %v579_v2 = vadd.f32 1.0, %v4008_v51  ;;  %4029 = vpow2.f32 %v3104_v12  ;;  %1775 = vmatprep.subr.bf16.mxu0 %v3815_v44  ;;  %2001 = vmatprep.subr.bf16.mxu1 %v3818_v19 }
 0x135   :  { %v4012_v57 = vpop.eup %4011  ;;  %v837_v63 = vpack.c.bf16 %v801_v48, %v797_v59  ;;  %v612_v31 = vadd.f32 1.0, %v4010_v11  ;;  %4031 = vpow2.f32 %v3107_v27  ;;  %v3116_v48 = vmul.f32 -1.442695, %v4865_v49 }
 0x136   :  { %v4014_v25 = vpop.eup %4013  ;;  %4033 = vrcp.f32 %v579_v2  ;;  %v613_v62 = vadd.f32 1.0, %v4012_v57  ;;  %v5870_v2 = vld [vmem:[#allocation2_spill] sm:$0xff] }
 0x137   :  { %v4016_v35 = vpop.eup %4015  ;;  %4035 = vrcp.f32 %v612_v31  ;;  %v616_v3 = vadd.f32 1.0, %v4014_v25  ;;  %1726 = vmatprep.mubr.bf16.mxu0 %v837_v63  ;;  %1952 = vmatprep.mubr.bf16.mxu1 %v837_v63  ;;  %v3119_v57 = vmul.f32 -1.442695, %v5870_v2  ;;  %v5871_v31 = vld [vmem:[#allocation3_spill] sm:$0xff]  ;;  %v5872_v25 = vld [vmem:[#allocation4_spill] sm:$0xff] }
 0x138   :  { %v4018_v43 = vpop.eup %4017  ;;  %4037 = vrcp.f32 %v613_v62  ;;  %v617_v30 = vadd.f32 1.0, %v4016_v35  ;;  %1727 = vmatmul.mubr.bf16.gmra.mrb[56].mxu0 %v836_v37  ;;  %1953 = vmatmul.mubr.bf16.gmra.mrb[56].mxu1 %v836_v37  ;;  %v3123_v62 = vmul.f32 -1.442695, %v5872_v25 }
 0x139   :  { %v4020_v7 = vpop.eup %4019  ;;  %4039 = vrcp.f32 %v616_v3  ;;  %v582_v0 = vadd.f32 1.0, %v4018_v43  ;;  %1776 = vmatpush1.bf16.msra.mxu0 %v3813_v60  ;;  %2002 = vmatpush1.bf16.msra.mxu1 %v3816_v36  ;;  %v3120_v60 = vmul.f32 -1.442695, %v5871_v31 }
 0x13a   :  { %v4022_v50 = vpop.eup %4021  ;;  %v766_v23 = vmul.f32 %v4020_v7, %v4732_v1  ;;  %4041 = vrcp.f32 %v617_v30  ;;  %1777 = vmatprep.subr.bf16.mxu0 %v3821_v20  ;;  %2003 = vmatprep.subr.bf16.mxu1 %v3824_v18 }
 0x13b   :  { %v4024_v13 = vpop.eup %4023  ;;  %4043 = vrcp.f32 %v582_v0  ;;  %v767_v15 = vmul.f32 %v4022_v50, %v4734_v4 }
 0x13c   :  { %v4026_v53 = vpop.eup %4025  ;;  %v770_v12 = vmul.f32 %v4024_v13, %v4738_v8  ;;  %4045 = vpow2.f32 %v3108_v55  ;;  %v3115_v8 = vmul.f32 -1.442695, %v4855_v42 }
 0x13d   :  { %v4028_v1 = vpop.eup %4027  ;;  %v583_v44 = vadd.f32 1.0, %v4026_v53  ;;  %4047 = vpow2.f32 %v3111_v46  ;;  %1778 = vmatpush1.bf16.msra.mxu0 %v3819_v34  ;;  %2004 = vmatpush1.bf16.msra.mxu1 %v3822_v39 }
 0x13e   :  { %v4030_v19 = vpop.eup %4029  ;;  %v5129_v47 = vpack.c.bf16 %v770_v12, %v766_v23  ;;  %v586_v27 = vadd.f32 1.0, %v4028_v1  ;;  %4049 = vpow2.f32 %v3112_v24  ;;  %3362 = vmatprep.subr.bf16.mxu0 %v3825_v33  ;;  %3426 = vmatprep.subr.bf16.mxu1 %v3827_v32  ;;  %v5875_v32 = vld [vmem:[#allocation7_spill] sm:$0xff]  ;;  %v3131_v12 = vmul.f32 -1.442695, %v4970_v38 }
 0x13f   :  { %v4032_v45 = vpop.eup %4031  ;;  %4051 = vrcp.f32 %v583_v44  ;;  %v587_v58 = vadd.f32 1.0, %v4030_v19 }
 0x140   :  { %v4034_v51 = vpop.eup %4033  ;;  %4053 = vrcp.f32 %v586_v27  ;;  %v590_v59 = vadd.f32 1.0, %v4032_v45 }
 0x141   :  { %v4036_v11 = vpop.eup %4035  ;;  %v771_v37 = vmul.f32 %v4034_v51, %v4748_v16  ;;  %4055 = vrcp.f32 %v587_v58  ;;  %v5873_v16 = vld [vmem:[#allocation5_spill] sm:$0xff] }
 0x142   :  { %v4038_v63 = vpop.eup %4037  ;;  %4057 = vrcp.f32 %v590_v59  ;;  %v804_v18 = vmul.f32 %v4036_v11, %v4927_v22  ;;  %v3124_v3 = vmul.f32 -1.442695, %v5873_v16 }
 0x143   :  { %v4040_v4 = vpop.eup %4039  ;;  %v5137_v36 = vpack.c.bf16 %v771_v37, %v767_v15  ;;  %4059 = vpow2.f32 %v3115_v8  ;;  %v805_v30 = vmul.f32 %v4038_v63, %v4938_v10  ;;  %v3831_v63 = vld [vmem:[%s5848_s4 + $0xc8] sm:$0xff]  }
 0x144   :  { %v4042_v20 = vpop.eup %4041  ;;  %v808_v35 = vmul.f32 %v4040_v4, %v4949_v29  ;;  %4061 = vpow2.f32 %v3116_v48  ;;  %v5874_v29 = vld [vmem:[#allocation6_spill] sm:$0xff] }
 0x145   :  { %v4044_v43 = vpop.eup %4043  ;;  %v809_v55 = vmul.f32 %v4042_v20, %v4954_v9  ;;  %4063 = vpow2.f32 %v3119_v57  ;;  %v3127_v23 = vmul.f32 -1.442695, %v5874_v29  ;;  %v3128_v9 = vmul.f32 -1.442695, %v5875_v32  ;;  %v3829_v57 = vld [vmem:[%s5848_s4 + $0x48] sm:$0xff]   ;;  %v5876_v20 = vld [vmem:[#allocation8_spill] sm:$0xff] }
 0x146   :  { %v4046_v34 = vpop.eup %4045  ;;  %v840_v7 = vpack.c.bf16 %v808_v35, %v804_v18  ;;  %4065 = vpow2.f32 %v3120_v60  ;;  %v774_v33 = vmul.f32 %v4044_v43, %v4758_v41  ;;  %v3132_v41 = vmul.f32 -1.442695, %v4977_v26  ;;  %v5877_v43 = vld [vmem:[#allocation9_spill] sm:$0xff] }
 0x147   :  { %v4048_v0 = vpop.eup %4047  ;;  %v841_v46 = vpack.c.bf16 %v809_v55, %v805_v30  ;;  %v591_v39 = vadd.f32 1.0, %v4046_v34  ;;  %4067 = vpow2.f32 %v3123_v62  ;;  %v3135_v62 = vmul.f32 -1.442695, %v4990_v61 }
 0x148   :  { %v4050_v50 = vpop.eup %4049  ;;  %v594_v22 = vadd.f32 1.0, %v4048_v0  ;;  %4069 = vpow2.f32 %v3124_v3  ;;  %v3136_v30 = vmul.f32 -1.442695, %v5877_v43 }
 0x149   :  { %v4052_v24 = vpop.eup %4051  ;;  %4071 = vrcp.f32 %v591_v39  ;;  %v595_v10 = vadd.f32 1.0, %v4050_v50  ;;  %1736 = vmatprep.mubr.bf16.mxu0 %v841_v46  ;;  %1962 = vmatprep.mubr.bf16.mxu1 %v841_v46 }
 0x14a   :  { %v4054_v13 = vpop.eup %4053  ;;  %v775_v53 = vmul.f32 %v4052_v24, %v4766_v21  ;;  %4073 = vrcp.f32 %v594_v22  ;;  %1737 = vmatmul.mubr.bf16.gmra.mrb[60].mxu0 %v840_v7  ;;  %1963 = vmatmul.mubr.bf16.gmra.mrb[60].mxu1 %v840_v7  ;;  %v3830_v7 = vld [vmem:[%s5848_s4 + $0x8] sm:$0xff]  }
 0x14b   :  { %v4056_v1 = vpop.eup %4055  ;;  %v778_v44 = vmul.f32 %v4054_v13, %v4773_v54  ;;  %4075 = vrcp.f32 %v595_v10  ;;  %1779 = vmatprep.mubr.bf16.mxu0 %v5028_v5  ;;  %2005 = vmatprep.mubr.bf16.mxu1 %v5028_v5  ;;  %v3828_v5 = vld [vmem:[%s5848_s4 + $0x80] sm:$0xff]  }
 0x14c   :  { %v4058_v19 = vpop.eup %4057  ;;  %v779_v27 = vmul.f32 %v4056_v1, %v4784_v6  ;;  %4077 = vpow2.f32 %v3127_v23  ;;  %v3826_v6 = vld [vmem:[%s5848_s4] sm:$0xff]  }
 0x14d   :  { %v4060_v21 = vpop.eup %4059  ;;  %v5155_v45 = vpack.c.bf16 %v778_v44, %v774_v33  ;;  %4079 = vpow2.f32 %v3128_v9  ;;  %v782_v35 = vmul.f32 %v4058_v19, %v4806_v28  ;;  %v3832_v28 = vld [vmem:[%s5848_s4 + $0x88] sm:$0xff]   ;;  %v3834_v9 = vld [vmem:[%s5848_s4 + $0x10] sm:$0xff]  }
 0x14e   :  { %v4062_v15 = vpop.eup %4061  ;;  %v5157_v58 = vpack.c.bf16 %v779_v27, %v775_v53  ;;  %v598_v8 = vadd.f32 1.0, %v4060_v21  ;;  %4081 = vpow2.f32 %v3131_v12  ;;  %v3837_v53 = vld [vmem:[%s5848_s4 + $0x58] sm:$0xff]  }
 0x14f   :  { %v4064_v54 = vpop.eup %4063  ;;  %v599_v51 = vadd.f32 1.0, %v4062_v15  ;;  %4083 = vpow2.f32 %v3132_v41  ;;  %v3839_v12 = vld [vmem:[%s5848_s4 + $0xd8] sm:$0xff]  }
 0x150   :  { %v4066_v59 = vpop.eup %4065  ;;  %4085 = vrcp.f32 %v598_v8  ;;  %v602_v48 = vadd.f32 1.0, %v4064_v54  ;;  %v3838_v8 = vld [vmem:[%s5848_s4 + $0x18] sm:$0xff]  }
 0x151   :  { %v4068_v11 = vpop.eup %4067  ;;  %4087 = vrcp.f32 %v599_v51  ;;  %v603_v37 = vadd.f32 1.0, %v4066_v59 }
 0x152   :  { %v4070_v60 = vpop.eup %4069  ;;  %4089 = vrcp.f32 %v602_v48  ;;  %v606_v4 = vadd.f32 1.0, %v4068_v11  ;;  %1780 = vmatmul.mubr.bf16.vlgmr.msra.gmra.mrb[32].mxu0 %v5876_v20  ;;  %2006 = vmatmul.mubr.bf16.vlgmr.msra.gmra.mrb[32].mxu1 %v5876_v20 }
 0x153   :  { %v4072_v18 = vpop.eup %4071  ;;  %4091 = vrcp.f32 %v603_v37  ;;  %v607_v3 = vadd.f32 1.0, %v4070_v60  ;;  %1789 = vmatprep.mubr.bf16.mxu0 %v5083_v56  ;;  %2015 = vmatprep.mubr.bf16.mxu1 %v5083_v56  ;;  %v3835_v56 = vld [vmem:[%s5848_s4 + $0xd0] sm:$0xff]  }
 0x154   :  { %v4074_v55 = vpop.eup %4073  ;;  %v783_v34 = vmul.f32 %v4072_v18, %v4814_v17  ;;  %4093 = vrcp.f32 %v606_v4  ;;  %3363 = vmatpush3.bf16.msra.mxu0 %v3826_v6  ;;  %3427 = vmatpush3.bf16.msra.mxu1 %v3828_v5  ;;  %v3833_v17 = vld [vmem:[%s5848_s4 + $0x50] sm:$0xff]  }
 0x155   :  { %v4076_v0 = vpop.eup %4075  ;;  %v786_v46 = vmul.f32 %v4074_v55, %v4821_v52  ;;  %4095 = vrcp.f32 %v607_v3  ;;  %3364 = vmatprep.subr.bf16.mxu0 %v3829_v57  ;;  %3428 = vmatprep.subr.bf16.mxu1 %v3831_v63  ;;  %v3847_v55 = vld [vmem:[%s5848_s4 + $0xe8] sm:$0xff]  }
 0x156   :  { %v4078_v39 = vpop.eup %4077  ;;  %v787_v50 = vmul.f32 %v4076_v0, %v4834_v14  ;;  %4097 = vpow2.f32 %v3135_v62  ;;  %v3836_v14 = vld [vmem:[%s5848_s4 + $0x90] sm:$0xff]  }
 0x157   :  { %v4080_v22 = vpop.eup %4079  ;;  %v5193_v23 = vpack.c.bf16 %v786_v46, %v782_v35  ;;  %v610_v24 = vadd.f32 1.0, %v4078_v39  ;;  %4099 = vpow2.f32 %v3136_v30  ;;  %v3851_v0 = vld [vmem:[%s5848_s4 + $0xf0] sm:$0xff]   ;;  %v3855_v39 = vld [vmem:[%s5848_s4 + $0xf8] sm:$0xff]  }
 0x158   :  { %v4082_v52 = vpop.eup %4081  ;;  %v5195_v33 = vpack.c.bf16 %v787_v50, %v783_v34  ;;  %v611_v10 = vadd.f32 1.0, %v4080_v22  ;;  %3365 = vmatpush3.bf16.msra.mxu0 %v3830_v7  ;;  %3429 = vmatpush3.bf16.msra.mxu1 %v3832_v28  ;;  %v3846_v34 = vld [vmem:[%s5848_s4 + $0x28] sm:$0xff]   ;;  %v3849_v28 = vld [vmem:[%s5848_s4 + $0x70] sm:$0xff]   ;;  %v3854_v50 = vld [vmem:[%s5848_s4 + $0x38] sm:$0xff]  }
 0x159   :  { %v4084_v13 = vpop.eup %4083  ;;  %4101 = vrcp.f32 %v610_v24  ;;  %3366 = vmatprep.subr.bf16.mxu0 %v3833_v17  ;;  %3430 = vmatprep.subr.bf16.mxu1 %v3835_v56  ;;  %v614_v19 = vadd.f32 1.0, %v4082_v52  ;;  %v3848_v7 = vld [vmem:[%s5848_s4 + $0xa8] sm:$0xff]   ;;  %v3850_v46 = vld [vmem:[%s5848_s4 + $0x30] sm:$0xff]   ;;  %v3853_v56 = vld [vmem:[%s5848_s4 + $0x78] sm:$0xff]  }
 0x15a   :  { %v4086_v1 = vpop.eup %4085  ;;  %4103 = vrcp.f32 %v611_v10  ;;  %1790 = vmatmul.mubr.bf16.gmra.mrb[36].mxu0 %v5075_v40  ;;  %2016 = vmatmul.mubr.bf16.gmra.mrb[36].mxu1 %v5075_v40  ;;  %v615_v15 = vadd.f32 1.0, %v4084_v13  ;;  %v3840_v40 = vld [vmem:[%s5848_s4 + $0x98] sm:$0xff]   ;;  %v3852_v17 = vld [vmem:[%s5848_s4 + $0xb0] sm:$0xff]   ;;  %v972_v10 = vld [vmem:[%s5849_s3] sm:$0xf] }
 0x15b   :  { %v4088_v44 = vpop.eup %4087  ;;  %v790_v41 = vmul.f32 %v4086_v1, %v4855_v42  ;;  %1799 = vmatprep.mubr.bf16.mxu0 %v5137_v36  ;;  %2025 = vmatprep.mubr.bf16.mxu1 %v5137_v36  ;;  %4105 = vrcp.f32 %v614_v19  ;;  %v3856_v22 = vld [vmem:[%s5848_s4 + $0xb8] sm:$0xff]  }
 0x15c   :  { %v4090_v27 = vpop.eup %4089  ;;  %v791_v21 = vmul.f32 %v4088_v44, %v4865_v49  ;;  %3367 = vmatpush3.bf16.msra.mxu0 %v3834_v9  ;;  %3431 = vmatpush3.bf16.msra.mxu1 %v3836_v14  ;;  %4107 = vrcp.f32 %v615_v15 }
 0x15d   :  { %v4092_v42 = vpop.eup %4091  ;;  %v794_v54 = vmul.f32 %v4090_v27, %v5870_v2  ;;  %3368 = vmatprep.subr.bf16.mxu0 %v3837_v53  ;;  %3432 = vmatprep.subr.bf16.mxu1 %v3839_v12 }
 0x15e   :  { %v4094_v36 = vpop.eup %4093  ;;  %v795_v51 = vmul.f32 %v4092_v42, %v5871_v31 }
 0x15f   :  { %v4096_v49 = vpop.eup %4095  ;;  %v834_v59 = vpack.c.bf16 %v794_v54, %v790_v41  ;;  %v798_v37 = vmul.f32 %v4094_v36, %v5872_v25 }
 0x160   :  { %v4098_v48 = vpop.eup %4097  ;;  %v835_v6 = vpack.c.bf16 %v795_v51, %v791_v21  ;;  %3369 = vmatpush3.bf16.msra.mxu0 %v3838_v8  ;;  %3433 = vmatpush3.bf16.msra.mxu1 %v3840_v40  ;;  %v799_v31 = vmul.f32 %v4096_v49, %v5873_v16 }
 0x161   :  { %v4100_v5 = vpop.eup %4099  ;;  %v618_v11 = vadd.f32 1.0, %v4098_v48 }
 0x162   :  { %v619_v57 = vadd.f32 1.0, %v4100_v5  ;;  %1800 = vmatmul.mubr.bf16.gmra.mrb[40].mxu0 %v5129_v47  ;;  %2026 = vmatmul.mubr.bf16.gmra.mrb[40].mxu1 %v5129_v47 }
 0x163   :  { %v4102_v2 = vpop.eup %4101  ;;  %4109 = vrcp.f32 %v618_v11  ;;  %1809 = vmatprep.mubr.bf16.mxu0 %v5157_v58  ;;  %2035 = vmatprep.mubr.bf16.mxu1 %v5157_v58 }
 0x164   :  { %v4104_v63 = vpop.eup %4103  ;;  %v802_v60 = vmul.f32 %v4102_v2, %v5874_v29  ;;  %4111 = vrcp.f32 %v619_v57 }
 0x165   :  { %v803_v4 = vmul.f32 %v4104_v63, %v5875_v32  ;;  %v4106_v20 = vpop.eup %4105 }
 0x166   :  { %v838_v25 = vpack.c.bf16 %v802_v60, %v798_v37  ;;  %v4108_v18 = vpop.eup %4107  ;;  %v806_v47 = vmul.f32 %v4106_v20, %v4970_v38  ;;  %v3843_v38 = vld [vmem:[%s5848_s4 + $0xe0] sm:$0xff]  }
 0x167   :  { %v839_v62 = vpack.c.bf16 %v803_v4, %v799_v31  ;;  %v807_v29 = vmul.f32 %v4108_v18, %v4977_v26  ;;  %v3841_v26 = vld [vmem:[%s5848_s4 + $0x60] sm:$0xff]   ;;  %3434 = vmatprep.subr.bf16.mxu1 %v3843_v38 }
 0x168   :  { %3370 = vmatprep.subr.bf16.mxu0 %v3841_v26 }
 0x16a   :  { %1810 = vmatmul.mubr.bf16.gmra.mrb[44].mxu0 %v5155_v45  ;;  %2036 = vmatmul.mubr.bf16.gmra.mrb[44].mxu1 %v5155_v45  ;;  %v3844_v45 = vld [vmem:[%s5848_s4 + $0xa0] sm:$0xff]  }
 0x16b   :  { %1819 = vmatprep.mubr.bf16.mxu0 %v5195_v33  ;;  %2045 = vmatprep.mubr.bf16.mxu1 %v5195_v33 }
 0x16c   :  { %3435 = vmatpush3.bf16.msra.mxu1 %v3844_v45 }
 0x16d   :  { %v4110_v16 = vpop.eup %4109  ;;  %3436 = vmatprep.subr.bf16.mxu1 %v3847_v55 }
 0x16e   :  { %v4112_v58 = vpop.eup %4111  ;;  %v810_v32 = vmul.f32 %v4110_v16, %v4990_v61  ;;  %v3842_v61 = vld [vmem:[%s5848_s4 + $0x20] sm:$0xff]  }
 0x16f   :  { %v811_v35 = vmul.f32 %v4112_v58, %v5877_v43  ;;  %3371 = vmatpush3.bf16.msra.mxu0 %v3842_v61  ;;  %v3845_v43 = vld [vmem:[%s5848_s4 + $0x68] sm:$0xff]  }
 0x170   :  { %v842_v3 = vpack.c.bf16 %v810_v32, %v806_v47  ;;  %3372 = vmatprep.subr.bf16.mxu0 %v3845_v43  ;;  %3437 = vmatpush3.bf16.msra.mxu1 %v3848_v7 }
 0x171   :  { %v843_v30 = vpack.c.bf16 %v811_v35, %v807_v29  ;;  %3438 = vmatprep.subr.bf16.mxu1 %v3851_v0 }
 0x172   :  { %1820 = vmatmul.mubr.bf16.gmra.mrb[48].mxu0 %v5193_v23  ;;  %2046 = vmatmul.mubr.bf16.gmra.mrb[48].mxu1 %v5193_v23  ;;  %v974_v23 = vlaneseq }
 0x173   :  { %1829 = vmatprep.mubr.bf16.mxu0 %v835_v6  ;;  %2055 = vmatprep.mubr.bf16.mxu1 %v835_v6 }
 0x174   :  { %3373 = vmatpush3.bf16.msra.mxu0 %v3846_v34  ;;  %3439 = vmatpush3.bf16.msra.mxu1 %v3852_v17  ;;  %v975_v24 = vshrl.u32 %v974_v23, 7 }
 0x175   :  { %3374 = vmatprep.subr.bf16.mxu0 %v3849_v28  ;;  %3440 = vmatprep.subr.bf16.mxu1 %v3855_v39 }
 0x176   :  { %v976_v52 = vsub.s32 0, %v975_v24  ;;  %v984_v33 = vsub.s32 2, %v975_v24  ;;  %v980_v9 = vsub.s32 1, %v975_v24  ;;  %v988_v14 = vsub.s32 3, %v975_v24 }
 0x178   :  { %3375 = vmatpush3.bf16.msra.mxu0 %v3850_v46  ;;  %3441 = vmatpush3.bf16.msra.mxu1 %v3856_v22  ;;  %v5292_v13 = vrot.slane %v972_v10, %v976_v52  ;;  %v5294_v53 = vrot.slane %v972_v10, %v984_v33  ;;  %v5296_v12 = vrot.slane %v972_v10, %v980_v9 }
 0x179   :  { %3376 = vmatprep.subr.bf16.mxu0 %v3853_v56  ;;  %v5298_v1 = vrot.slane %v972_v10, %v988_v14 }
 0x17a   :  { %1830 = vmatmul.mubr.bf16.gmra.mrb[52].mxu0 %v834_v59  ;;  %2056 = vmatmul.mubr.bf16.gmra.mrb[52].mxu1 %v834_v59 }
 0x17b   :  { %1839 = vmatprep.mubr.bf16.mxu0 %v839_v62  ;;  %2065 = vmatprep.mubr.bf16.mxu1 %v839_v62 }
 0x17c   :  { %3377 = vmatpush3.bf16.msra.mxu0 %v3854_v50 }
 0x182   :  { %1840 = vmatmul.mubr.bf16.gmra.mrb[56].mxu0 %v838_v25  ;;  %2066 = vmatmul.mubr.bf16.gmra.mrb[56].mxu1 %v838_v25 }
 0x183   :  { %1849 = vmatprep.mubr.bf16.mxu0 %v843_v30  ;;  %2075 = vmatprep.mubr.bf16.mxu1 %v843_v30 }
 0x18a   :  { %1850 = vmatmul.mubr.bf16.gmra.mrb[60].mxu0 %v842_v3  ;;  %2076 = vmatmul.mubr.bf16.gmra.mrb[60].mxu1 %v842_v3 }
 0x225   :  { %v1781_v44 = vpop.f32.mrb[32].mxu0  ;;  %v2007_v41 = vpop.f32.mrb[32].mxu1 }
 0x226   :  { %v5301_v19 = vadd.f32 %v1781_v44, %v5292_v13  ;;  %v5304_v27 = vadd.f32 %v2007_v41, %v5294_v53  ;;  %v1783_v21 = vpop.f32.mrb[33].mxu0  ;;  %v2009_v15 = vpop.f32.mrb[33].mxu1 }
 0x227   :  { %v5307_v8 = vadd.f32 %v1783_v21, %v5296_v12  ;;  %v5310_v40 = vadd.f32 %v2009_v15, %v5298_v1  ;;  %v1785_v42 = vpop.f32.mrb[34].mxu0  ;;  %v2011_v54 = vpop.f32.mrb[34].mxu1 }
 0x228   :  { %v3265_v36 = vmul.f32 -1.442695, %v5301_v19  ;;  %v3267_v51 = vmul.f32 -1.442695, %v5304_v27  ;;  %v5315_v49 = vadd.f32 %v1785_v42, %v5292_v13  ;;  %v5318_v59 = vadd.f32 %v2011_v54, %v5294_v53  ;;  %v1787_v48 = vpop.f32.mrb[35].mxu0  ;;  %v2013_v6 = vpop.f32.mrb[35].mxu1 }
 0x229   :  { %v3266_v5 = vmul.f32 -1.442695, %v5307_v8  ;;  %v3268_v11 = vmul.f32 -1.442695, %v5310_v40  ;;  %v5323_v37 = vadd.f32 %v1787_v48, %v5296_v12  ;;  %v5326_v57 = vadd.f32 %v2013_v6, %v5298_v1 }
 0x22a   :  { %4113 = vpow2.f32 %v3265_v36  ;;  %v3269_v2 = vmul.f32 -1.442695, %v5315_v49  ;;  %v3271_v31 = vmul.f32 -1.442695, %v5318_v59 }
 0x22b   :  { %4115 = vpow2.f32 %v3267_v51  ;;  %v3270_v63 = vmul.f32 -1.442695, %v5323_v37  ;;  %v3272_v60 = vmul.f32 -1.442695, %v5326_v57 }
 0x22c   :  { %4117 = vpow2.f32 %v3266_v5 }
 0x22d   :  { %4119 = vpow2.f32 %v3268_v11  ;;  %v1791_v4 = vpop.f32.mrb[36].mxu0  ;;  %v2017_v25 = vpop.f32.mrb[36].mxu1 }
 0x22e   :  { %4121 = vpow2.f32 %v3269_v2  ;;  %v5333_v62 = vadd.f32 %v1791_v4, %v5292_v13  ;;  %v5336_v20 = vadd.f32 %v2017_v25, %v5294_v53  ;;  %v1793_v18 = vpop.f32.mrb[37].mxu0  ;;  %v2019_v47 = vpop.f32.mrb[37].mxu1 }
 0x22f   :  { %4123 = vpow2.f32 %v3271_v31  ;;  %v5339_v16 = vadd.f32 %v1793_v18, %v5296_v12  ;;  %v5342_v29 = vadd.f32 %v2019_v47, %v5298_v1  ;;  %v1795_v58 = vpop.f32.mrb[38].mxu0  ;;  %v2021_v32 = vpop.f32.mrb[38].mxu1 }
 0x230   :  { %4125 = vpow2.f32 %v3270_v63  ;;  %v3273_v35 = vmul.f32 -1.442695, %v5333_v62  ;;  %v3275_v3 = vmul.f32 -1.442695, %v5336_v20  ;;  %v5347_v30 = vadd.f32 %v1795_v58, %v5292_v13  ;;  %v1797_v26 = vpop.f32.mrb[39].mxu0  ;;  %v2023_v38 = vpop.f32.mrb[39].mxu1 }
 0x231   :  { %4127 = vpow2.f32 %v3272_v60  ;;  %v3274_v61 = vmul.f32 -1.442695, %v5339_v16  ;;  %v3276_v45 = vmul.f32 -1.442695, %v5342_v29  ;;  %v5353_v54 = vadd.f32 %v2021_v32, %v5294_v53 }
 0x232   :  { %4129 = vpow2.f32 %v3273_v35  ;;  %v3277_v43 = vmul.f32 -1.442695, %v5347_v30  ;;  %v5356_v5 = vadd.f32 %v1797_v26, %v5296_v12  ;;  %v5359_v63 = vadd.f32 %v2023_v38, %v5298_v1 }
 0x233   :  { %4131 = vpow2.f32 %v3275_v3  ;;  %v3279_v47 = vmul.f32 -1.442695, %v5353_v54 }
 0x234   :  { %v4114_v55 = vpop.eup %4113  ;;  %4133 = vpow2.f32 %v3274_v61 }
 0x235   :  { %v4116_v34 = vpop.eup %4115  ;;  %v2278_v7 = vadd.f32 1.0, %v4114_v55  ;;  %4135 = vpow2.f32 %v3276_v45  ;;  %v1801_v28 = vpop.f32.mrb[40].mxu0 }
 0x236   :  { %v2027_v0 = vpop.f32.mrb[40].mxu1  ;;  %v4118_v46 = vpop.eup %4117  ;;  %v2280_v17 = vadd.f32 1.0, %v4116_v34  ;;  %4137 = vpow2.f32 %v3277_v43  ;;  %v5365_v58 = vadd.f32 %v1801_v28, %v5292_v13 }
 0x237   :  { %v1803_v56 = vpop.f32.mrb[41].mxu0  ;;  %v2029_v39 = vpop.f32.mrb[41].mxu1  ;;  %4139 = vrcp.f32 %v2278_v7  ;;  %v2279_v22 = vadd.f32 1.0, %v4118_v46  ;;  %v5372_v38 = vadd.f32 %v2027_v0, %v5294_v53  ;;  %v3278_v7 = vmul.f32 -1.442695, %v5356_v5 }
 0x238   :  { %v4120_v50 = vpop.eup %4119  ;;  %v1805_v23 = vpop.f32.mrb[42].mxu0  ;;  %4141 = vrcp.f32 %v2280_v17  ;;  %v5375_v61 = vadd.f32 %v1803_v56, %v5296_v12  ;;  %v5383_v28 = vadd.f32 %v2029_v39, %v5298_v1  ;;  %v3280_v0 = vmul.f32 -1.442695, %v5359_v63 }
 0x239   :  { %v2031_v24 = vpop.f32.mrb[42].mxu1  ;;  %v4122_v52 = vpop.eup %4121  ;;  %v2281_v33 = vadd.f32 1.0, %v4120_v50  ;;  %4143 = vrcp.f32 %v2279_v22  ;;  %v5389_v56 = vadd.f32 %v1805_v23, %v5292_v13  ;;  %v3281_v22 = vmul.f32 -1.442695, %v5365_v58 }
 0x23a   :  { %v1807_v10 = vpop.f32.mrb[43].mxu0  ;;  %v4124_v9 = vpop.eup %4123  ;;  %v2282_v14 = vadd.f32 1.0, %v4122_v52  ;;  %v3282_v39 = vmul.f32 -1.442695, %v5375_v61 }
 0x23b   :  { %v2033_v44 = vpop.f32.mrb[43].mxu1  ;;  %v4126_v41 = vpop.eup %4125  ;;  %4145 = vrcp.f32 %v2281_v33  ;;  %v2284_v21 = vadd.f32 1.0, %v4124_v9  ;;  %v3283_v33 = vmul.f32 -1.442695, %v5372_v38  ;;  %v5395_v9 = vadd.f32 %v2031_v24, %v5294_v53 }
 0x23c   :  { %v4128_v15 = vpop.eup %4127  ;;  %4147 = vrcp.f32 %v2282_v14  ;;  %v2283_v42 = vadd.f32 1.0, %v4126_v41  ;;  %v3284_v41 = vmul.f32 -1.442695, %v5383_v28  ;;  %v5399_v23 = vadd.f32 %v1807_v10, %v5296_v12 }
 0x23d   :  { %v4130_v36 = vpop.eup %4129  ;;  %4149 = vrcp.f32 %v2284_v21  ;;  %v2285_v51 = vadd.f32 1.0, %v4128_v15  ;;  %v1811_v11 = vpop.f32.mrb[44].mxu0  ;;  %v5402_v21 = vadd.f32 %v2033_v44, %v5298_v1 }
 0x23e   :  { %v4132_v48 = vpop.eup %4131  ;;  %4151 = vrcp.f32 %v2283_v42  ;;  %v2286_v6 = vadd.f32 1.0, %v4130_v36  ;;  %v2037_v60 = vpop.f32.mrb[44].mxu1 }
 0x23f   :  { %v4134_v2 = vpop.eup %4133  ;;  %4153 = vrcp.f32 %v2285_v51  ;;  %v2288_v31 = vadd.f32 1.0, %v4132_v48  ;;  %v5361_v4 = vpop.f32.mrb[45].mxu0  ;;  %v3285_v48 = vmul.f32 -1.442695, %v5389_v56 }
 0x240   :  { %v4136_v25 = vpop.eup %4135  ;;  %4155 = vrcp.f32 %v2286_v6  ;;  %v2287_v18 = vadd.f32 1.0, %v4134_v2  ;;  %v5367_v32 = vpop.f32.mrb[45].mxu1 }
 0x241   :  { %v5369_v35 = vpop.f32.mrb[46].mxu0  ;;  %v4138_v3 = vpop.eup %4137  ;;  %4157 = vrcp.f32 %v2288_v31  ;;  %v2289_v26 = vadd.f32 1.0, %v4136_v25  ;;  %v5422_v25 = vadd.f32 %v1811_v11, %v5292_v13 }
 0x242   :  { %v5377_v45 = vpop.f32.mrb[46].mxu1  ;;  %v5379_v43 = vpop.f32.mrb[47].mxu0  ;;  %4159 = vrcp.f32 %v2287_v18  ;;  %v2290_v34 = vadd.f32 1.0, %v4138_v3  ;;  %v3287_v3 = vmul.f32 -1.442695, %v5395_v9 }
 0x243   :  { %v4140_v55 = vpop.eup %4139  ;;  %v5385_v46 = vpop.f32.mrb[47].mxu1  ;;  %4161 = vrcp.f32 %v2289_v26  ;;  %5878 = vst [vmem:[#allocation2_spill] sm:$0xff] %v5422_v25  ;;  %v5432_v26 = vadd.f32 %v2037_v60, %v5294_v53 }
 0x244   :  { %v4142_v17 = vpop.eup %4141  ;;  %4163 = vrcp.f32 %v2290_v34  ;;  %v5409_v51 = vmul.f32 %v4140_v55, %v5301_v19  ;;  %v3286_v34 = vmul.f32 -1.442695, %v5399_v23 }
 0x245   :  { %v4144_v50 = vpop.eup %4143  ;;  %4165 = vpow2.f32 %v3279_v47  ;;  %v5404_v15 = vpop.f32.mrb[48].mxu0  ;;  %v2472_v2 = vmul.f32 %v4142_v17, %v5304_v27  ;;  %5879 = vst [vmem:[#allocation3_spill] sm:$0xff] %v5432_v26  ;;  %v3288_v17 = vmul.f32 -1.442695, %v5402_v21 }
 0x246   :  { %v4146_v52 = vpop.eup %4145  ;;  %4167 = vpow2.f32 %v3278_v7  ;;  %v5406_v42 = vpop.f32.mrb[48].mxu1 }
 0x247   :  { %v4148_v14 = vpop.eup %4147  ;;  %4169 = vpow2.f32 %v3280_v0  ;;  %v5415_v6 = vpop.f32.mrb[49].mxu0 }
 0x248   :  { %v4150_v36 = vpop.eup %4149  ;;  %v5412_v24 = vmul.f32 %v4148_v14, %v5315_v49  ;;  %v5417_v10 = vpop.f32.mrb[49].mxu1  ;;  %4171 = vpow2.f32 %v3281_v22 }
 0x249   :  { %v4152_v44 = vpop.eup %4151  ;;  %v2476_v31 = vmul.f32 %v4150_v36, %v5318_v59  ;;  %v5424_v19 = vpop.f32.mrb[50].mxu0  ;;  %4173 = vpow2.f32 %v3283_v33  ;;  %v3289_v33 = vmul.f32 -1.442695, %v5422_v25 }
 0x24a   :  { %v5426_v49 = vpop.f32.mrb[50].mxu1  ;;  %v4154_v18 = vpop.eup %4153  ;;  %v2534_v47 = vpack.c.bf16 %v5412_v24, %v5409_v51  ;;  %4175 = vpow2.f32 %v3282_v39  ;;  %v2475_v60 = vmul.f32 %v4152_v44, %v5323_v37  ;;  %v3291_v39 = vmul.f32 -1.442695, %v5432_v26 }
 0x24b   :  { %v5434_v27 = vpop.f32.mrb[51].mxu0  ;;  %v5436_v59 = vpop.f32.mrb[51].mxu1  ;;  %v2536_v55 = vpack.c.bf16 %v2476_v31, %v2472_v2  ;;  %4177 = vpow2.f32 %v3284_v41  ;;  %v2477_v22 = vmul.f32 %v4154_v18, %v5326_v57  ;;  %v2471_v51 = vmul.f32 %v4144_v50, %v5307_v8 }
 0x24c   :  { %v5438_v11 = vpop.eup %4155  ;;  %4179 = vpow2.f32 %v3285_v48  ;;  %v2473_v41 = vmul.f32 %v4146_v52, %v5310_v40 }
 0x24d   :  { %v5441_v7 = vpop.eup %4157  ;;  %4181 = vpow2.f32 %v3287_v3  ;;  %v5454_v24 = vpop.f32.mrb[52].mxu0  ;;  %v2535_v18 = vpack.c.bf16 %v2475_v60, %v2471_v51  ;;  %v5476_v51 = vadd.f32 %v5367_v32, %v5298_v1 }
 0x24e   :  { %v5444_v0 = vpop.eup %4159  ;;  %4183 = vpow2.f32 %v3286_v34  ;;  %v5456_v2 = vpop.f32.mrb[52].mxu1  ;;  %v2537_v3 = vpack.c.bf16 %v2477_v22, %v2473_v41 }
 0x24f   :  { %v5449_v14 = vpop.eup %4161  ;;  %4185 = vpow2.f32 %v3288_v17  ;;  %v5458_v57 = vpop.f32.mrb[53].mxu0  ;;  %2861 = vmatprep.mubr.bf16.mxu0 %v2535_v18 }
 0x250   :  { %v4164_v36 = vpop.eup %4163  ;;  %v5460_v48 = vpop.f32.mrb[53].mxu1  ;;  %4187 = vpow2.f32 %v3289_v33  ;;  %2958 = vmatprep.mubr.bf16.mxu1 %v2537_v3  ;;  %2862 = vmatmul.mubr.bf16.vlgmr.msra.gmra.mrb[64].mxu0 %v2534_v47  ;;  %v5483_v47 = vadd.f32 %v5369_v35, %v5292_v13  ;;  %v5499_v35 = vadd.f32 %v5379_v43, %v5296_v12 }
 0x251   :  { %v4166_v37 = vpop.eup %4165  ;;  %v5462_v26 = vpop.f32.mrb[54].mxu0  ;;  %4189 = vpow2.f32 %v3291_v39  ;;  %2959 = vmatmul.mubr.bf16.vlgmr.msra.gmra.mrb[64].mxu1 %v2536_v55  ;;  %v5472_v39 = vadd.f32 %v5361_v4, %v5296_v12  ;;  %v5487_v4 = vadd.f32 %v5377_v45, %v5294_v53 }
 0x252   :  { %v4168_v44 = vpop.eup %4167  ;;  %v2292_v31 = vadd.f32 1.0, %v4166_v37  ;;  %v5464_v8 = vpop.f32.mrb[54].mxu1 }
 0x253   :  { %v4170_v40 = vpop.eup %4169  ;;  %v2291_v50 = vadd.f32 1.0, %v4168_v44  ;;  %v5466_v52 = vpop.f32.mrb[55].mxu0  ;;  %v5479_v44 = vmul.f32 %v4164_v36, %v5347_v30  ;;  %v5495_v30 = vmul.f32 %v5438_v11, %v5333_v62 }
 0x254   :  { %v5468_v34 = vpop.f32.mrb[55].mxu1  ;;  %v4172_v17 = vpop.eup %4171  ;;  %4191 = vrcp.f32 %v2292_v31  ;;  %v2293_v25 = vadd.f32 1.0, %v4170_v40 }
 0x255   :  { %v4174_v37 = vpop.eup %4173  ;;  %4193 = vrcp.f32 %v2291_v50  ;;  %v2294_v60 = vadd.f32 1.0, %v4172_v17  ;;  %v5489_v18 = vpop.f32.mrb[56].mxu0  ;;  %v2538_v43 = vpack.c.bf16 %v5479_v44, %v5495_v30  ;;  %v3294_v44 = vmul.f32 -1.442695, %v5499_v35 }
 0x256   :  { %v4176_v22 = vpop.eup %4175  ;;  %4195 = vrcp.f32 %v2293_v25  ;;  %v2296_v33 = vadd.f32 1.0, %v4174_v37  ;;  %v5491_v32 = vpop.f32.mrb[56].mxu1  ;;  %v3290_v37 = vmul.f32 -1.442695, %v5472_v39  ;;  %v5526_v30 = vadd.f32 %v5404_v15, %v5292_v13 }
 0x257   :  { %v4178_v41 = vpop.eup %4177  ;;  %4197 = vrcp.f32 %v2294_v60  ;;  %v2295_v31 = vadd.f32 1.0, %v4176_v22  ;;  %v5501_v40 = vpop.f32.mrb[57].mxu0  ;;  %v3292_v60 = vmul.f32 -1.442695, %v5476_v51  ;;  %v5541_v15 = vadd.f32 %v5417_v10, %v5298_v1 }
 0x258   :  { %v4180_v25 = vpop.eup %4179  ;;  %4199 = vrcp.f32 %v2296_v33  ;;  %v2297_v55 = vadd.f32 1.0, %v4178_v41  ;;  %v5503_v50 = vpop.f32.mrb[57].mxu1  ;;  %v3293_v33 = vmul.f32 -1.442695, %v5483_v47  ;;  %v2481_v10 = vmul.f32 %v5449_v14, %v5342_v29 }
 0x259   :  { %v4182_v3 = vpop.eup %4181  ;;  %4201 = vrcp.f32 %v2295_v31  ;;  %v2298_v36 = vadd.f32 1.0, %v4180_v25  ;;  %5880 = vst [vmem:[#allocation4_spill] sm:$0xff] %v5503_v50  ;;  %v5507_v22 = vpop.f32.mrb[58].mxu0  ;;  %v3297_v14 = vmul.f32 -1.442695, %v5526_v30 }
 0x25a   :  { %v4184_v45 = vpop.eup %4183  ;;  %4203 = vrcp.f32 %v2297_v55  ;;  %v2300_v17 = vadd.f32 1.0, %v4182_v3  ;;  %5881 = vst [vmem:[#allocation5_spill] sm:$0xff] %v5507_v22  ;;  %v5512_v41 = vpop.f32.mrb[58].mxu1  ;;  %v3295_v3 = vmul.f32 -1.442695, %v5487_v4  ;;  %v5519_v22 = vadd.f32 %v5385_v46, %v5298_v1 }
 0x25b   :  { %v4186_v62 = vpop.eup %4185  ;;  %4205 = vrcp.f32 %v2298_v36  ;;  %v2299_v11 = vadd.f32 1.0, %v4184_v45  ;;  %5882 = vst [vmem:[#allocation6_spill] sm:$0xff] %v5512_v41  ;;  %v5514_v31 = vpop.f32.mrb[59].mxu0  ;;  %v5534_v46 = vadd.f32 %v5415_v6, %v5296_v12  ;;  %v5548_v6 = vadd.f32 %v5424_v19, %v5292_v13 }
 0x25c   :  { %5883 = vst [vmem:[#allocation7_spill] sm:$0xff] %v5514_v31  ;;  %v4188_v25 = vpop.eup %4187  ;;  %4207 = vrcp.f32 %v2300_v17  ;;  %v2301_v55 = vadd.f32 1.0, %v4186_v62  ;;  %v5521_v36 = vpop.f32.mrb[59].mxu1  ;;  %v5530_v62 = vadd.f32 %v5406_v42, %v5294_v53  ;;  %v2479_v42 = vmul.f32 %v5444_v0, %v5339_v16 }
 0x25d   :  { %5884 = vst [vmem:[#allocation8_spill] sm:$0xff] %v5521_v36  ;;  %v4190_v45 = vpop.eup %4189  ;;  %4209 = vrcp.f32 %v2299_v11  ;;  %v2302_v50 = vadd.f32 1.0, %v4188_v25  ;;  %v2480_v11 = vmul.f32 %v5441_v7, %v5336_v20  ;;  %v5550_v41 = vpop.f32.mrb[60].mxu0  ;;  %v3296_v19 = vmul.f32 -1.442695, %v5519_v22 }
 0x25e   :  { %v4192_v31 = vpop.eup %4191  ;;  %4211 = vrcp.f32 %v2301_v55  ;;  %v2304_v17 = vadd.f32 1.0, %v4190_v45  ;;  %v5552_v20 = vpop.f32.mrb[60].mxu1 }
 0x25f   :  { %v4194_v36 = vpop.eup %4193  ;;  %v2484_v25 = vmul.f32 %v4192_v31, %v5353_v54  ;;  %4213 = vrcp.f32 %v2302_v50  ;;  %v5557_v16 = vpop.f32.mrb[61].mxu0  ;;  %v5564_v31 = vadd.f32 %v5426_v49, %v5294_v53 }
 0x260   :  { %v4196_v55 = vpop.eup %4195  ;;  %v2483_v45 = vmul.f32 %v4194_v36, %v5356_v5  ;;  %4215 = vrcp.f32 %v2304_v17  ;;  %v5559_v5 = vpop.f32.mrb[61].mxu1 }
 0x261   :  { %v4198_v54 = vpop.eup %4197  ;;  %v2485_v7 = vmul.f32 %v4196_v55, %v5359_v63  ;;  %4217 = vpow2.f32 %v3290_v37  ;;  %v2540_v50 = vpack.c.bf16 %v2484_v25, %v2480_v11  ;;  %v5566_v17 = vpop.f32.mrb[62].mxu0  ;;  %v5573_v37 = vadd.f32 %v5434_v27, %v5296_v12 }
 0x262   :  { %v4200_v0 = vpop.eup %4199  ;;  %4219 = vpow2.f32 %v3292_v60  ;;  %v2539_v36 = vpack.c.bf16 %v2483_v45, %v2479_v42  ;;  %5885 = vst [vmem:[#allocation9_spill] sm:$0xff] %v5566_v17  ;;  %v5568_v29 = vpop.f32.mrb[62].mxu1  ;;  %v3299_v55 = vmul.f32 -1.442695, %v5530_v62  ;;  %v3300_v45 = vmul.f32 -1.442695, %v5541_v15 }
 0x263   :  { %5886 = vst [vmem:[#allocation10_spill] sm:$0xff] %v5568_v29  ;;  %v4202_v63 = vpop.eup %4201  ;;  %4221 = vpow2.f32 %v3293_v33  ;;  %v2541_v60 = vpack.c.bf16 %v2485_v7, %v2481_v10  ;;  %v5575_v11 = vpop.f32.mrb[63].mxu0  ;;  %v3298_v33 = vmul.f32 -1.442695, %v5534_v46  ;;  %v3301_v29 = vmul.f32 -1.442695, %v5548_v6 }
 0x264   :  { %5887 = vst [vmem:[#allocation11_spill] sm:$0xff] %v5575_v11  ;;  %v5577_v25 = vpop.f32.mrb[63].mxu1  ;;  %v4204_v49 = vpop.eup %4203  ;;  %4223 = vpow2.f32 %v3295_v3  ;;  %2869 = vmatprep.mubr.bf16.mxu0 %v2539_v36  ;;  %v2486_v10 = vmul.f32 %v4198_v54, %v5365_v58  ;;  %v3303_v3 = vmul.f32 -1.442695, %v5564_v31  ;;  %v3302_v11 = vmul.f32 -1.442695, %v5573_v37 }
 0x265   :  { %5888 = vst [vmem:[#allocation12_spill] sm:$0xff] %v5577_v25  ;;  %v4206_v42 = vpop.eup %4205  ;;  %4225 = vpow2.f32 %v3294_v44  ;;  %2966 = vmatprep.mubr.bf16.mxu1 %v2541_v60  ;;  %2870 = vmatmul.mubr.bf16.gmra.mrb[68].mxu0 %v2538_v43  ;;  %v2488_v44 = vmul.f32 %v4200_v0, %v5372_v38  ;;  %v2487_v43 = vmul.f32 %v4202_v63, %v5375_v61 }
 0x266   :  { %v4208_v27 = vpop.eup %4207  ;;  %v2490_v7 = vmul.f32 %v4206_v42, %v5389_v56  ;;  %4227 = vpow2.f32 %v3296_v19  ;;  %2967 = vmatmul.mubr.bf16.gmra.mrb[68].mxu1 %v2540_v50  ;;  %v2489_v54 = vmul.f32 %v4204_v49, %v5383_v28 }
 0x267   :  { %v4210_v36 = vpop.eup %4209  ;;  %v2492_v25 = vmul.f32 %v4208_v27, %v5395_v9  ;;  %4229 = vpow2.f32 %v3297_v14 }
 0x268   :  { %v4212_v17 = vpop.eup %4211  ;;  %v2491_v60 = vmul.f32 %v4210_v36, %v5399_v23  ;;  %4231 = vpow2.f32 %v3299_v55  ;;  %v2542_v58 = vpack.c.bf16 %v2490_v7, %v2486_v10  ;;  %v5599_v7 = vadd.f32 %v5436_v59, %v5298_v1 }
 0x269   :  { %v5591_v56 = vpop.eup %4213  ;;  %v2493_v50 = vmul.f32 %v4212_v17, %v5402_v21  ;;  %4233 = vpow2.f32 %v3298_v33  ;;  %v2544_v38 = vpack.c.bf16 %v2492_v25, %v2488_v44  ;;  %v5615_v59 = vadd.f32 %v5460_v48, %v5298_v1 }
 0x26a   :  { %v5595_v0 = vpop.eup %4215  ;;  %4235 = vpow2.f32 %v3300_v45  ;;  %v2543_v9 = vpack.c.bf16 %v2491_v60, %v2487_v43  ;;  %v5607_v43 = vadd.f32 %v5456_v2, %v5294_v53  ;;  %v5611_v60 = vadd.f32 %v5458_v57, %v5296_v12 }
 0x26b   :  { %v4218_v19 = vpop.eup %4217  ;;  %4237 = vpow2.f32 %v3301_v29  ;;  %v2545_v14 = vpack.c.bf16 %v2493_v50, %v2489_v54  ;;  %v5623_v2 = vadd.f32 %v5464_v8, %v5294_v53  ;;  %v5627_v57 = vadd.f32 %v5466_v52, %v5296_v12 }
 0x26c   :  { %v4220_v61 = vpop.eup %4219  ;;  %v2303_v63 = vadd.f32 1.0, %v4218_v19  ;;  %4239 = vpow2.f32 %v3303_v3  ;;  %2877 = vmatprep.mubr.bf16.mxu0 %v2543_v9  ;;  %v5603_v3 = vadd.f32 %v5454_v24, %v5292_v13  ;;  %v5619_v24 = vadd.f32 %v5462_v26, %v5292_v13 }
 0x26d   :  { %v4222_v23 = vpop.eup %4221  ;;  %v2305_v55 = vadd.f32 1.0, %v4220_v61  ;;  %4241 = vpow2.f32 %v3302_v11  ;;  %2974 = vmatprep.mubr.bf16.mxu1 %v2545_v14  ;;  %2878 = vmatmul.mubr.bf16.gmra.mrb[72].mxu0 %v2542_v58  ;;  %v3304_v48 = vmul.f32 -1.442695, %v5599_v7 }
 0x26e   :  { %v4224_v28 = vpop.eup %4223  ;;  %4243 = vrcp.f32 %v2303_v63  ;;  %v2306_v21 = vadd.f32 1.0, %v4222_v23  ;;  %2975 = vmatmul.mubr.bf16.gmra.mrb[72].mxu1 %v2544_v38  ;;  %v3305_v14 = vmul.f32 -1.442695, %v5603_v3  ;;  %v3307_v63 = vmul.f32 -1.442695, %v5607_v43 }
 0x26f   :  { %v4226_v17 = vpop.eup %4225  ;;  %4245 = vrcp.f32 %v2305_v55  ;;  %v2308_v25 = vadd.f32 1.0, %v4224_v28  ;;  %v3306_v23 = vmul.f32 -1.442695, %v5611_v60  ;;  %v3308_v55 = vmul.f32 -1.442695, %v5615_v59 }
 0x270   :  { %v4228_v49 = vpop.eup %4227  ;;  %4247 = vrcp.f32 %v2306_v21  ;;  %v2307_v29 = vadd.f32 1.0, %v4226_v17  ;;  %v3309_v52 = vmul.f32 -1.442695, %v5619_v24  ;;  %v5637_v28 = vadd.f32 %v5468_v34, %v5298_v1 }
 0x271   :  { %v4230_v42 = vpop.eup %4229  ;;  %4249 = vrcp.f32 %v2308_v25  ;;  %v2309_v33 = vadd.f32 1.0, %v4228_v49  ;;  %v3311_v17 = vmul.f32 -1.442695, %v5623_v2  ;;  %v3310_v25 = vmul.f32 -1.442695, %v5627_v57 }
 0x272   :  { %v4232_v45 = vpop.eup %4231  ;;  %4251 = vrcp.f32 %v2307_v29  ;;  %v2310_v27 = vadd.f32 1.0, %v4230_v42  ;;  %v5643_v49 = vadd.f32 %v5489_v18, %v5292_v13  ;;  %v5889_v42 = vld [vmem:[#allocation2_spill] sm:$0xff]  ;;  %v5650_v34 = vadd.f32 %v5491_v32, %v5294_v53 }
 0x273   :  { %v4234_v10 = vpop.eup %4233  ;;  %4253 = vrcp.f32 %v2309_v33  ;;  %v2312_v11 = vadd.f32 1.0, %v4232_v45  ;;  %v2494_v33 = vmul.f32 %v5591_v56, %v5889_v42  ;;  %v5657_v18 = vadd.f32 %v5501_v40, %v5296_v12  ;;  %v5891_v40 = vld [vmem:[#allocation4_spill] sm:$0xff] }
 0x274   :  { %v4236_v36 = vpop.eup %4235  ;;  %4255 = vrcp.f32 %v2310_v27  ;;  %v2311_v44 = vadd.f32 1.0, %v4234_v10  ;;  %v5890_v10 = vld [vmem:[#allocation3_spill] sm:$0xff] }
 0x275   :  { %v4238_v58 = vpop.eup %4237  ;;  %4257 = vrcp.f32 %v2312_v11  ;;  %v2313_v54 = vadd.f32 1.0, %v4236_v36  ;;  %v2496_v11 = vmul.f32 %v5595_v0, %v5890_v10 }
 0x276   :  { %v4240_v50 = vpop.eup %4239  ;;  %4259 = vrcp.f32 %v2311_v44  ;;  %v2314_v38 = vadd.f32 1.0, %v4238_v58 }
 0x277   :  { %v4242_v9 = vpop.eup %4241  ;;  %4261 = vrcp.f32 %v2313_v54  ;;  %v2316_v19 = vadd.f32 1.0, %v4240_v50 }
 0x278   :  { %v4244_v26 = vpop.eup %4243  ;;  %4263 = vrcp.f32 %v2314_v38  ;;  %v2315_v61 = vadd.f32 1.0, %v4242_v9  ;;  %v3312_v38 = vmul.f32 -1.442695, %v5637_v28  ;;  %v5666_v9 = vadd.f32 %v5891_v40, %v5298_v1  ;;  %v5894_v40 = vld [vmem:[#allocation7_spill] sm:$0xff] }
 0x279   :  { %v4246_v8 = vpop.eup %4245  ;;  %4265 = vrcp.f32 %v2316_v19  ;;  %v2495_v56 = vmul.f32 %v4244_v26, %v5472_v39  ;;  %v3314_v26 = vmul.f32 -1.442695, %v5657_v18 }
 0x27a   :  { %v4248_v21 = vpop.eup %4247  ;;  %4267 = vrcp.f32 %v2315_v61  ;;  %v2497_v54 = vmul.f32 %v4246_v8, %v5476_v51  ;;  %v3315_v51 = vmul.f32 -1.442695, %v5650_v34  ;;  %v3316_v8 = vmul.f32 -1.442695, %v5666_v9 }
 0x27b   :  { %v4250_v29 = vpop.eup %4249  ;;  %v2498_v45 = vmul.f32 %v4248_v21, %v5483_v47  ;;  %4269 = vpow2.f32 %v3304_v48 }
 0x27c   :  { %v4252_v27 = vpop.eup %4251  ;;  %v2500_v36 = vmul.f32 %v4250_v29, %v5487_v4  ;;  %4271 = vpow2.f32 %v3305_v14 }
 0x27d   :  { %v4254_v44 = vpop.eup %4253  ;;  %v2499_v47 = vmul.f32 %v4252_v27, %v5499_v35  ;;  %4273 = vpow2.f32 %v3307_v63  ;;  %v2546_v58 = vpack.c.bf16 %v2498_v45, %v2494_v33  ;;  %v3313_v35 = vmul.f32 -1.442695, %v5643_v49 }
 0x27e   :  { %v4256_v32 = vpop.eup %4255  ;;  %v2501_v50 = vmul.f32 %v4254_v44, %v5519_v22  ;;  %4275 = vpow2.f32 %v3306_v23  ;;  %v2548_v0 = vpack.c.bf16 %v2500_v36, %v2496_v11 }
 0x27f   :  { %v4258_v4 = vpop.eup %4257  ;;  %4277 = vpow2.f32 %v3308_v55  ;;  %v2547_v39 = vpack.c.bf16 %v2499_v47, %v2495_v56  ;;  %v2502_v63 = vmul.f32 %v4256_v32, %v5526_v30  ;;  %v5892_v32 = vld [vmem:[#allocation5_spill] sm:$0xff] }
 0x280   :  { %v4260_v19 = vpop.eup %4259  ;;  %4279 = vpow2.f32 %v3309_v52  ;;  %v2549_v48 = vpack.c.bf16 %v2501_v50, %v2497_v54  ;;  %v5677_v52 = vmul.f32 %v4258_v4, %v5530_v62  ;;  %v5688_v54 = vadd.f32 %v5892_v32, %v5292_v13  ;;  %v5893_v4 = vld [vmem:[#allocation6_spill] sm:$0xff] }
 0x281   :  { %v5669_v14 = vpop.eup %4261  ;;  %4281 = vpow2.f32 %v3311_v17  ;;  %2885 = vmatprep.mubr.bf16.mxu0 %v2547_v39  ;;  %v5696_v39 = vadd.f32 %v5894_v40, %v5296_v12 }
 0x282   :  { %v4264_v22 = vpop.eup %4263  ;;  %4283 = vpow2.f32 %v3310_v25  ;;  %2982 = vmatprep.mubr.bf16.mxu1 %v2549_v48  ;;  %2886 = vmatmul.mubr.bf16.gmra.mrb[76].mxu0 %v2546_v58  ;;  %v2503_v25 = vmul.f32 %v4260_v19, %v5534_v46 }
 0x283   :  { %v4266_v61 = vpop.eup %4265  ;;  %v2506_v23 = vmul.f32 %v4264_v22, %v5548_v6  ;;  %4285 = vpow2.f32 %v3312_v38  ;;  %2983 = vmatmul.mubr.bf16.gmra.mrb[76].mxu1 %v2548_v0  ;;  %v5692_v38 = vadd.f32 %v5893_v4, %v5294_v53 }
 0x284   :  { %v4268_v55 = vpop.eup %4267  ;;  %v5680_v21 = vmul.f32 %v4266_v61, %v5564_v31  ;;  %4287 = vpow2.f32 %v3313_v35  ;;  %v3317_v61 = vmul.f32 -1.442695, %v5688_v54 }
 0x285   :  { %v4270_v17 = vpop.eup %4269  ;;  %v2507_v29 = vmul.f32 %v4268_v55, %v5573_v37  ;;  %4289 = vpow2.f32 %v3315_v51  ;;  %v2550_v30 = vpack.c.bf16 %v2506_v23, %v2502_v63  ;;  %v5895_v63 = vld [vmem:[#allocation8_spill] sm:$0xff] }
 0x286   :  { %v4272_v6 = vpop.eup %4271  ;;  %v2317_v42 = vadd.f32 1.0, %v4270_v17  ;;  %4291 = vpow2.f32 %v3314_v26  ;;  %v2552_v33 = vpack.c.bf16 %v5680_v21, %v5677_v52  ;;  %v5701_v23 = vadd.f32 %v5895_v63, %v5298_v1 }
 0x287   :  { %v4274_v45 = vpop.eup %4273  ;;  %v2318_v62 = vadd.f32 1.0, %v4272_v6  ;;  %4293 = vpow2.f32 %v3316_v8  ;;  %v2551_v27 = vpack.c.bf16 %v2507_v29, %v2503_v25  ;;  %v3319_v17 = vmul.f32 -1.442695, %v5692_v38 }
 0x288   :  { %v4276_v31 = vpop.eup %4275  ;;  %4295 = vrcp.f32 %v2317_v42  ;;  %v2320_v10 = vadd.f32 1.0, %v4274_v45  ;;  %v3318_v25 = vmul.f32 -1.442695, %v5696_v39  ;;  %v5707_v29 = vadd.f32 %v5550_v41, %v5292_v13 }
 0x289   :  { %v4278_v11 = vpop.eup %4277  ;;  %4297 = vrcp.f32 %v2318_v62  ;;  %v2319_v46 = vadd.f32 1.0, %v4276_v31  ;;  %2893 = vmatprep.mubr.bf16.mxu0 %v2551_v27  ;;  %v5711_v6 = vadd.f32 %v5552_v20, %v5294_v53  ;;  %v5715_v42 = vadd.f32 %v5557_v16, %v5296_v12  ;;  %v5896_v31 = vld [vmem:[#allocation9_spill] sm:$0xff] }
 0x28a   :  { %v4280_v37 = vpop.eup %4279  ;;  %4299 = vrcp.f32 %v2320_v10  ;;  %v2321_v36 = vadd.f32 1.0, %v4278_v11  ;;  %2894 = vmatmul.mubr.bf16.gmra.mrb[80].mxu0 %v2550_v30  ;;  %v5719_v45 = vadd.f32 %v5559_v5, %v5298_v1  ;;  %v2505_v27 = vmul.f32 %v5669_v14, %v5541_v15  ;;  %v5897_v11 = vld [vmem:[#allocation10_spill] sm:$0xff]  ;;  %v5898_v15 = vld [vmem:[#allocation11_spill] sm:$0xff] }
 0x28b   :  { %v4282_v44 = vpop.eup %4281  ;;  %4301 = vrcp.f32 %v2319_v46  ;;  %v2322_v56 = vadd.f32 1.0, %v4280_v37  ;;  %v5726_v10 = vadd.f32 %v5896_v31, %v5292_v13  ;;  %v3320_v16 = vmul.f32 -1.442695, %v5701_v23 }
 0x28c   :  { %v4284_v47 = vpop.eup %4283  ;;  %4303 = vrcp.f32 %v2321_v36  ;;  %v2324_v58 = vadd.f32 1.0, %v4282_v44  ;;  %v5731_v46 = vadd.f32 %v5897_v11, %v5294_v53  ;;  %v3321_v37 = vmul.f32 -1.442695, %v5707_v29 }
 0x28d   :  { %v4286_v50 = vpop.eup %4285  ;;  %4305 = vrcp.f32 %v2322_v56  ;;  %v2323_v0 = vadd.f32 1.0, %v4284_v47  ;;  %v3323_v13 = vmul.f32 -1.442695, %v5711_v6  ;;  %v3322_v44 = vmul.f32 -1.442695, %v5715_v42 }
 0x28e   :  { %v4288_v19 = vpop.eup %4287  ;;  %4307 = vrcp.f32 %v2324_v58  ;;  %v2325_v35 = vadd.f32 1.0, %v4286_v50  ;;  %v3324_v53 = vmul.f32 -1.442695, %v5719_v45  ;;  %v3325_v47 = vmul.f32 -1.442695, %v5726_v10  ;;  %v5899_v58 = vld [vmem:[#allocation12_spill] sm:$0xff] }
 0x28f   :  { %v4290_v48 = vpop.eup %4289  ;;  %4309 = vrcp.f32 %v2323_v0  ;;  %v2326_v51 = vadd.f32 1.0, %v4288_v19  ;;  %v5744_v32 = vadd.f32 %v5899_v58, %v5298_v1  ;;  %v3327_v4 = vmul.f32 -1.442695, %v5731_v46 }
 0x290   :  { %v4292_v22 = vpop.eup %4291  ;;  %4311 = vrcp.f32 %v2325_v35  ;;  %v2328_v26 = vadd.f32 1.0, %v4290_v48 }
 0x291   :  { %v4294_v8 = vpop.eup %4293  ;;  %v2327_v55 = vadd.f32 1.0, %v4292_v22  ;;  %4313 = vrcp.f32 %v2326_v51 }
 0x292   :  { %v4296_v30 = vpop.eup %4295  ;;  %4315 = vrcp.f32 %v2328_v26 }
 0x293   :  { %v4298_v62 = vpop.eup %4297  ;;  %v2509_v41 = vmul.f32 %v4296_v30, %v5599_v7  ;;  %4317 = vrcp.f32 %v2327_v55  ;;  %v5736_v7 = vadd.f32 %v5898_v15, %v5296_v12 }
 0x294   :  { %v4300_v20 = vpop.eup %4299  ;;  %4319 = vpow2.f32 %v3317_v61  ;;  %v2510_v50 = vmul.f32 %v4298_v62, %v5603_v3  ;;  %v2329_v61 = vadd.f32 1.0, %v4294_v8 }
 0x295   :  { %v4302_v5 = vpop.eup %4301  ;;  %v2553_v14 = vpack.c.bf16 %v2509_v41, %v2505_v27  ;;  %4321 = vpow2.f32 %v3319_v17  ;;  %v2512_v19 = vmul.f32 %v4300_v20, %v5607_v43  ;;  %v3326_v1 = vmul.f32 -1.442695, %v5736_v7 }
 0x296   :  { %v4304_v36 = vpop.eup %4303  ;;  %4323 = vpow2.f32 %v3318_v25  ;;  %v2511_v3 = vmul.f32 %v4302_v5, %v5611_v60  ;;  %v3328_v43 = vmul.f32 -1.442695, %v5744_v32 }
 0x297   :  { %v4306_v56 = vpop.eup %4305  ;;  %2990 = vmatprep.mubr.bf16.mxu1 %v2553_v14  ;;  %4325 = vpow2.f32 %v3320_v16  ;;  %v2513_v22 = vmul.f32 %v4304_v36, %v5615_v59 }
 0x298   :  { %v4308_v12 = vpop.eup %4307  ;;  %v2514_v0 = vmul.f32 %v4306_v56, %v5619_v24  ;;  %2991 = vmatmul.mubr.bf16.gmra.mrb[80].mxu1 %v2552_v33  ;;  %4327 = vpow2.f32 %v3321_v37 }
 0x299   :  { %v4310_v40 = vpop.eup %4309  ;;  %v2516_v35 = vmul.f32 %v4308_v12, %v5623_v2  ;;  %4329 = vpow2.f32 %v3323_v13 }
 0x29a   :  { %v4312_v48 = vpop.eup %4311  ;;  %v2515_v24 = vmul.f32 %v4310_v40, %v5627_v57  ;;  %v2554_v51 = vpack.c.bf16 %v2514_v0, %v2510_v50  ;;  %4331 = vpow2.f32 %v3322_v44 }
 0x29b   :  { %v2517_v52 = vmul.f32 %v4312_v48, %v5637_v28  ;;  %v2556_v21 = vpack.c.bf16 %v2516_v35, %v2512_v19  ;;  %v4314_v33 = vpop.eup %4313  ;;  %4333 = vpow2.f32 %v3324_v53 }
 0x29c   :  { %v2555_v2 = vpack.c.bf16 %v2515_v24, %v2511_v3  ;;  %v4316_v26 = vpop.eup %4315  ;;  %4335 = vpow2.f32 %v3325_v47  ;;  %v2518_v50 = vmul.f32 %v4314_v33, %v5643_v49 }
 0x29d   :  { %v2557_v63 = vpack.c.bf16 %v2517_v52, %v2513_v22  ;;  %v4318_v60 = vpop.eup %4317  ;;  %4337 = vpow2.f32 %v3327_v4  ;;  %v2520_v40 = vmul.f32 %v4316_v26, %v5650_v34 }
 0x29e   :  { %2901 = vmatprep.mubr.bf16.mxu0 %v2555_v2  ;;  %v4320_v57 = vpop.eup %4319  ;;  %4339 = vpow2.f32 %v3326_v1  ;;  %v2519_v1 = vmul.f32 %v4318_v60, %v5657_v18 }
 0x29f   :  { %2998 = vmatprep.mubr.bf16.mxu1 %v2557_v63  ;;  %2902 = vmatmul.mubr.bf16.gmra.mrb[84].mxu0 %v2554_v51  ;;  %v4322_v59 = vpop.eup %4321  ;;  %v2330_v28 = vadd.f32 1.0, %v4320_v57  ;;  %4341 = vpow2.f32 %v3328_v43 }
 0x2a0   :  { %2999 = vmatmul.mubr.bf16.gmra.mrb[84].mxu1 %v2556_v21  ;;  %v4324_v55 = vpop.eup %4323  ;;  %4343 = vrcp.f32 %v2329_v61  ;;  %v2332_v17 = vadd.f32 1.0, %v4322_v59 }
 0x2a1   :  { %v4326_v25 = vpop.eup %4325  ;;  %4345 = vrcp.f32 %v2330_v28  ;;  %v2331_v30 = vadd.f32 1.0, %v4324_v55 }
 0x2a2   :  { %v4328_v8 = vpop.eup %4327  ;;  %4347 = vrcp.f32 %v2332_v17  ;;  %v2333_v62 = vadd.f32 1.0, %v4326_v25 }
 0x2a3   :  { %v4330_v27 = vpop.eup %4329  ;;  %4349 = vrcp.f32 %v2331_v30  ;;  %v2334_v41 = vadd.f32 1.0, %v4328_v8 }
 0x2a4   :  { %v4332_v31 = vpop.eup %4331  ;;  %4351 = vrcp.f32 %v2333_v62  ;;  %v2336_v20 = vadd.f32 1.0, %v4330_v27 }
 0x2a5   :  { %v4334_v16 = vpop.eup %4333  ;;  %4353 = vrcp.f32 %v2334_v41  ;;  %v2335_v11 = vadd.f32 1.0, %v4332_v31 }
 0x2a6   :  { %v4336_v5 = vpop.eup %4335  ;;  %4355 = vrcp.f32 %v2336_v20  ;;  %v2337_v37 = vadd.f32 1.0, %v4334_v16 }
 0x2a7   :  { %v4338_v15 = vpop.eup %4337  ;;  %4357 = vrcp.f32 %v2335_v11  ;;  %v2338_v14 = vadd.f32 1.0, %v4336_v5 }
 0x2a8   :  { %v4340_v36 = vpop.eup %4339  ;;  %4359 = vrcp.f32 %v2337_v37  ;;  %v2340_v13 = vadd.f32 1.0, %v4338_v15 }
 0x2a9   :  { %v4342_v44 = vpop.eup %4341  ;;  %4361 = vrcp.f32 %v2338_v14  ;;  %v2339_v56 = vadd.f32 1.0, %v4340_v36 }
 0x2aa   :  { %v4344_v53 = vpop.eup %4343  ;;  %4363 = vrcp.f32 %v2340_v13  ;;  %v2341_v47 = vadd.f32 1.0, %v4342_v44 }
 0x2ab   :  { %v4346_v58 = vpop.eup %4345  ;;  %4365 = vrcp.f32 %v2339_v56  ;;  %v2521_v51 = vmul.f32 %v4344_v53, %v5666_v9 }
 0x2ac   :  { %v4348_v12 = vpop.eup %4347  ;;  %v2522_v0 = vmul.f32 %v4346_v58, %v5688_v54  ;;  %4367 = vrcp.f32 %v2341_v47 }
 0x2ad   :  { %v4350_v4 = vpop.eup %4349  ;;  %v2524_v19 = vmul.f32 %v4348_v12, %v5692_v38 }
 0x2ae   :  { %v4352_v35 = vpop.eup %4351  ;;  %v2523_v48 = vmul.f32 %v4350_v4, %v5696_v39  ;;  %v2558_v3 = vpack.c.bf16 %v2522_v0, %v2518_v50 }
 0x2af   :  { %v4354_v24 = vpop.eup %4353  ;;  %v2525_v22 = vmul.f32 %v4352_v35, %v5701_v23  ;;  %v2560_v49 = vpack.c.bf16 %v2524_v19, %v2520_v40 }
 0x2b0   :  { %v4356_v52 = vpop.eup %4355  ;;  %v2559_v54 = vpack.c.bf16 %v2523_v48, %v2519_v1  ;;  %v2526_v18 = vmul.f32 %v4354_v24, %v5707_v29 }
 0x2b1   :  { %v4358_v21 = vpop.eup %4357  ;;  %v2561_v33 = vpack.c.bf16 %v2525_v22, %v2521_v51  ;;  %v2528_v9 = vmul.f32 %v4356_v52, %v5711_v6 }
 0x2b2   :  { %v4360_v43 = vpop.eup %4359  ;;  %2909 = vmatprep.mubr.bf16.mxu0 %v2559_v54  ;;  %v2527_v61 = vmul.f32 %v4358_v21, %v5715_v42  ;;  %v5779_v42 = vld [vmem:[%s5850_s5] ss:$0 sm:$0xff] }
 0x2b3   :  { %v4362_v34 = vpop.eup %4361  ;;  %3006 = vmatprep.mubr.bf16.mxu1 %v2561_v33  ;;  %2910 = vmatmul.mubr.bf16.gmra.mrb[88].mxu0 %v2558_v3  ;;  %v2529_v57 = vmul.f32 %v4360_v43, %v5719_v45 }
 0x2b4   :  { %v4364_v38 = vpop.eup %4363  ;;  %v2530_v39 = vmul.f32 %v4362_v34, %v5726_v10  ;;  %3007 = vmatmul.mubr.bf16.gmra.mrb[88].mxu1 %v2560_v49 }
 0x2b5   :  { %v4366_v2 = vpop.eup %4365  ;;  %v2532_v23 = vmul.f32 %v4364_v38, %v5731_v46 }
 0x2b6   :  { %v4368_v26 = vpop.eup %4367  ;;  %v2531_v63 = vmul.f32 %v4366_v2, %v5736_v7  ;;  %v2562_v60 = vpack.c.bf16 %v2530_v39, %v2526_v18 }
 0x2b7   :  { %v2533_v59 = vmul.f32 %v4368_v26, %v5744_v32  ;;  %v2564_v28 = vpack.c.bf16 %v2532_v23, %v2528_v9 }
 0x2b8   :  { %v2563_v29 = vpack.c.bf16 %v2531_v63, %v2527_v61 }
 0x2b9   :  { %v2565_v55 = vpack.c.bf16 %v2533_v59, %v2529_v57 }
 0x2ba   :  { %2917 = vmatprep.mubr.bf16.mxu0 %v2563_v29 }
 0x2bb   :  { %3014 = vmatprep.mubr.bf16.mxu1 %v2565_v55  ;;  %2918 = vmatmul.mubr.bf16.gmra.mrb[92].mxu0 %v2562_v60 }
 0x2bc   :  { %3015 = vmatmul.mubr.bf16.gmra.mrb[92].mxu1 %v2564_v28 }
 0x323   :  { %v3378_v6 = vpop.f32.mrb[64].mxu0 }
 0x324   :  { %v3442_v10 = vpop.f32.mrb[64].mxu1  ;;  %v3379_v46 = vpop.f32.mrb[65].mxu0 }
 0x325   :  { %v3443_v7 = vpop.f32.mrb[65].mxu1  ;;  %v3380_v17 = vadd.f32 %v3379_v46, %v3378_v6  ;;  %v3381_v25 = vpop.f32.mrb[66].mxu0 }
 0x326   :  { %v3444_v45 = vadd.f32 %v3443_v7, %v3442_v10  ;;  %v3445_v32 = vpop.f32.mrb[66].mxu1  ;;  %v3382_v30 = vpop.f32.mrb[67].mxu0 }
 0x327   :  { %v3446_v8 = vpop.f32.mrb[67].mxu1  ;;  %v2864_v62 = vadd.f32 %v3380_v17, %v5779_v42  ;;  %v3383_v27 = vadd.f32 %v3382_v30, %v3381_v25 }
 0x328   :  { %v3447_v41 = vadd.f32 %v3446_v8, %v3445_v32 }
 0x329   :  { %v2961_v31 = vadd.f32 %v3444_v45, %v2864_v62  ;;  %v2867_v20 = vadd.f32 %v3383_v27, %v5779_v42 }
 0x32b   :  { %3023 = vst [vmem:[%s5851_s6] sm:$0xff] %v2961_v31  ;;  %v2964_v16 = vadd.f32 %v3447_v41, %v2867_v20 }
 0x32d   :  { %3024 = vst [vmem:[%s5851_s6 + $0x8] sm:$0xff] %v2964_v16 }
 0x338   :  { %v3384_v11 = vpop.f32.mrb[68].mxu0 }
 0x339   :  { %v3448_v5 = vpop.f32.mrb[68].mxu1  ;;  %v3385_v37 = vpop.f32.mrb[69].mxu0 }
 0x33a   :  { %v3386_v15 = vadd.f32 %v3385_v37, %v3384_v11  ;;  %v3449_v14 = vpop.f32.mrb[69].mxu1  ;;  %v3387_v36 = vpop.f32.mrb[70].mxu0 }
 0x33b   :  { %v3450_v13 = vadd.f32 %v3449_v14, %v3448_v5  ;;  %v3451_v44 = vpop.f32.mrb[70].mxu1  ;;  %v3388_v56 = vpop.f32.mrb[71].mxu0 }
 0x33c   :  { %v2872_v53 = vadd.f32 %v3386_v15, %v5779_v42  ;;  %v3389_v47 = vadd.f32 %v3388_v56, %v3387_v36  ;;  %v3452_v58 = vpop.f32.mrb[71].mxu1 }
 0x33d   :  { %v3453_v12 = vadd.f32 %v3452_v58, %v3451_v44 }
 0x33e   :  { %v2969_v50 = vadd.f32 %v3450_v13, %v2872_v53  ;;  %v2875_v0 = vadd.f32 %v3389_v47, %v5779_v42 }
 0x340   :  { %3025 = vst [vmem:[%s5851_s6 + $0x10] sm:$0xff] %v2969_v50  ;;  %v2972_v4 = vadd.f32 %v3453_v12, %v2875_v0  ;;  %v3390_v40 = vpop.f32.mrb[72].mxu0 }
 0x341   :  { %v3454_v19 = vpop.f32.mrb[72].mxu1  ;;  %v3391_v35 = vpop.f32.mrb[73].mxu0 }
 0x342   :  { %3026 = vst [vmem:[%s5851_s6 + $0x18] sm:$0xff] %v2972_v4  ;;  %v3392_v1 = vadd.f32 %v3391_v35, %v3390_v40  ;;  %v3455_v48 = vpop.f32.mrb[73].mxu1  ;;  %v3393_v3 = vpop.f32.mrb[74].mxu0 }
 0x343   :  { %v3456_v24 = vadd.f32 %v3455_v48, %v3454_v19  ;;  %v3457_v51 = vpop.f32.mrb[74].mxu1  ;;  %v3394_v22 = vpop.f32.mrb[75].mxu0 }
 0x344   :  { %v2880_v49 = vadd.f32 %v3392_v1, %v5779_v42  ;;  %v3395_v52 = vadd.f32 %v3394_v22, %v3393_v3  ;;  %v3458_v54 = vpop.f32.mrb[75].mxu1 }
 0x345   :  { %v3459_v21 = vadd.f32 %v3458_v54, %v3457_v51 }
 0x346   :  { %v2977_v33 = vadd.f32 %v3456_v24, %v2880_v49  ;;  %v2883_v43 = vadd.f32 %v3395_v52, %v5779_v42 }
 0x348   :  { %3027 = vst [vmem:[%s5851_s6 + $0x20] sm:$0xff] %v2977_v33  ;;  %v2980_v34 = vadd.f32 %v3459_v21, %v2883_v43 }
 0x34a   :  { %3028 = vst [vmem:[%s5851_s6 + $0x28] sm:$0xff] %v2980_v34 }
 0x355   :  { %v3396_v38 = vpop.f32.mrb[76].mxu0 }
 0x356   :  { %v3460_v18 = vpop.f32.mrb[76].mxu1  ;;  %v3397_v39 = vpop.f32.mrb[77].mxu0 }
 0x357   :  { %v3398_v2 = vadd.f32 %v3397_v39, %v3396_v38  ;;  %v3461_v9 = vpop.f32.mrb[77].mxu1  ;;  %v3399_v23 = vpop.f32.mrb[78].mxu0 }
 0x358   :  { %v3462_v26 = vadd.f32 %v3461_v9, %v3460_v18  ;;  %v3463_v61 = vpop.f32.mrb[78].mxu1  ;;  %v3400_v63 = vpop.f32.mrb[79].mxu0 }
 0x359   :  { %v2888_v60 = vadd.f32 %v3398_v2, %v5779_v42  ;;  %v3401_v57 = vadd.f32 %v3400_v63, %v3399_v23  ;;  %v3464_v59 = vpop.f32.mrb[79].mxu1 }
 0x35a   :  { %v3465_v28 = vadd.f32 %v3464_v59, %v3463_v61 }
 0x35b   :  { %v2985_v29 = vadd.f32 %v3462_v26, %v2888_v60  ;;  %v2891_v55 = vadd.f32 %v3401_v57, %v5779_v42 }
 0x35d   :  { %3029 = vst [vmem:[%s5851_s6 + $0x30] sm:$0xff] %v2985_v29  ;;  %v2988_v6 = vadd.f32 %v3465_v28, %v2891_v55  ;;  %v3402_v10 = vpop.f32.mrb[80].mxu0 }
 0x35e   :  { %v3403_v46 = vpop.f32.mrb[81].mxu0 }
 0x35f   :  { %3030 = vst [vmem:[%s5851_s6 + $0x38] sm:$0xff] %v2988_v6  ;;  %v3404_v7 = vadd.f32 %v3403_v46, %v3402_v10  ;;  %v3405_v17 = vpop.f32.mrb[82].mxu0 }
 0x360   :  { %v3406_v45 = vpop.f32.mrb[83].mxu0 }
 0x361   :  { %v3407_v25 = vadd.f32 %v3406_v45, %v3405_v17  ;;  %v2896_v30 = vadd.f32 %v3404_v7, %v5779_v42 }
 0x363   :  { %v2899_v41 = vadd.f32 %v3407_v25, %v5779_v42 }
 0x36b   :  { %v3466_v32 = vpop.f32.mrb[80].mxu1 }
 0x36c   :  { %v3467_v8 = vpop.f32.mrb[81].mxu1 }
 0x36d   :  { %v3468_v62 = vadd.f32 %v3467_v8, %v3466_v32  ;;  %v3469_v27 = vpop.f32.mrb[82].mxu1 }
 0x36e   :  { %v3470_v31 = vpop.f32.mrb[83].mxu1 }
 0x36f   :  { %v2993_v20 = vadd.f32 %v3468_v62, %v2896_v30  ;;  %v3471_v16 = vadd.f32 %v3470_v31, %v3469_v27 }
 0x371   :  { %3031 = vst [vmem:[%s5851_s6 + $0x40] sm:$0xff] %v2993_v20  ;;  %v2996_v11 = vadd.f32 %v3471_v16, %v2899_v41 }
 0x372   :  { %v3408_v5 = vpop.f32.mrb[84].mxu0 }
 0x373   :  { %3032 = vst [vmem:[%s5851_s6 + $0x48] sm:$0xff] %v2996_v11  ;;  %v3472_v37 = vpop.f32.mrb[84].mxu1  ;;  %v3409_v15 = vpop.f32.mrb[85].mxu0 }
 0x374   :  { %v3410_v14 = vadd.f32 %v3409_v15, %v3408_v5  ;;  %v3473_v36 = vpop.f32.mrb[85].mxu1  ;;  %v3411_v13 = vpop.f32.mrb[86].mxu0 }
 0x375   :  { %v3474_v44 = vadd.f32 %v3473_v36, %v3472_v37  ;;  %v3475_v56 = vpop.f32.mrb[86].mxu1  ;;  %v3412_v53 = vpop.f32.mrb[87].mxu0 }
 0x376   :  { %v2904_v47 = vadd.f32 %v3410_v14, %v5779_v42  ;;  %v3413_v58 = vadd.f32 %v3412_v53, %v3411_v13  ;;  %v3476_v12 = vpop.f32.mrb[87].mxu1 }
 0x377   :  { %v3477_v50 = vadd.f32 %v3476_v12, %v3475_v56 }
 0x378   :  { %v3001_v0 = vadd.f32 %v3474_v44, %v2904_v47  ;;  %v2907_v4 = vadd.f32 %v3413_v58, %v5779_v42 }
 0x37a   :  { %3033 = vst [vmem:[%s5851_s6 + $0x50] sm:$0xff] %v3001_v0  ;;  %v3004_v40 = vadd.f32 %v3477_v50, %v2907_v4 }
 0x37c   :  { %3034 = vst [vmem:[%s5851_s6 + $0x58] sm:$0xff] %v3004_v40 }
 0x386   :  { %v3414_v19 = vpop.f32.mrb[88].mxu0 }
 0x387   :  { %v3478_v35 = vpop.f32.mrb[88].mxu1  ;;  %v3415_v1 = vpop.f32.mrb[89].mxu0 }
 0x388   :  { %v3416_v48 = vadd.f32 %v3415_v1, %v3414_v19  ;;  %v3479_v3 = vpop.f32.mrb[89].mxu1  ;;  %v3417_v24 = vpop.f32.mrb[90].mxu0 }
 0x389   :  { %v3480_v51 = vadd.f32 %v3479_v3, %v3478_v35  ;;  %v3481_v22 = vpop.f32.mrb[90].mxu1  ;;  %v3418_v49 = vpop.f32.mrb[91].mxu0 }
 0x38a   :  { %v2912_v52 = vadd.f32 %v3416_v48, %v5779_v42  ;;  %v3419_v54 = vadd.f32 %v3418_v49, %v3417_v24  ;;  %v3482_v21 = vpop.f32.mrb[91].mxu1 }
 0x38b   :  { %v3483_v33 = vadd.f32 %v3482_v21, %v3481_v22 }
 0x38c   :  { %v3009_v43 = vadd.f32 %v3480_v51, %v2912_v52  ;;  %v2915_v34 = vadd.f32 %v3419_v54, %v5779_v42 }
 0x38e   :  { %3035 = vst [vmem:[%s5851_s6 + $0x60] sm:$0xff] %v3009_v43  ;;  %v3012_v38 = vadd.f32 %v3483_v33, %v2915_v34  ;;  %v3420_v18 = vpop.f32.mrb[92].mxu0 }
 0x38f   :  { %v3484_v39 = vpop.f32.mrb[92].mxu1  ;;  %v3421_v2 = vpop.f32.mrb[93].mxu0 }
 0x390   :  { %3036 = vst [vmem:[%s5851_s6 + $0x68] sm:$0xff] %v3012_v38  ;;  %v3422_v9 = vadd.f32 %v3421_v2, %v3420_v18  ;;  %v3485_v23 = vpop.f32.mrb[93].mxu1  ;;  %v3423_v26 = vpop.f32.mrb[94].mxu0 }
 0x391   :  { %v3486_v61 = vadd.f32 %v3485_v23, %v3484_v39  ;;  %v3487_v63 = vpop.f32.mrb[94].mxu1  ;;  %v3424_v60 = vpop.f32.mrb[95].mxu0 }
 0x392   :  { %v2920_v57 = vadd.f32 %v3422_v9, %v5779_v42  ;;  %v3425_v59 = vadd.f32 %v3424_v60, %v3423_v26  ;;  %v3488_v28 = vpop.f32.mrb[95].mxu1 }
 0x393   :  { %v3489_v29 = vadd.f32 %v3488_v28, %v3487_v63 }
 0x394   :  { %v3017_v55 = vadd.f32 %v3486_v61, %v2920_v57  ;;  %v2923_v6 = vadd.f32 %v3425_v59, %v5779_v42 }
 0x396   :  { %3037 = vst [vmem:[%s5851_s6 + $0x70] sm:$0xff] %v3017_v55  ;;  %v3020_v10 = vadd.f32 %v3489_v29, %v2923_v6 }
 0x398   :  { %3038 = vst [vmem:[%s5851_s6 + $0x78] sm:$0xff] %v3020_v10 }

</bundles_post_ra>
